<compile_context>
chip_gen: v7x
topology: tpu7x:2x2x1
jax: 0.10.0
libtpu: 0.0.40
codegen_flags: <defaults>
</compile_context>

<pallas_src>
import functools

import jax
import jax.numpy as jnp
from jax.experimental import pallas as pl
from jax.experimental.pallas import tpu as pltpu

_EPS = 1e-5
_KC = 3          # kernel_count (grouped-conv channel multiplier) in the module
_LANE = 128      # TPU lane width; channel dims padded to a multiple of this


def _round_up(x, n):
    return ((x + n - 1) // n) * n


# ---------------------------------------------------------------------------
# Host-side helper matrices (tiny at these sizes; constant-folded under jit)
# ---------------------------------------------------------------------------
def _avgpool_matrix(h, w, k):
    """(HO*WO, H*W) matrix implementing AvgPool2d(k) (stride k, floor mode)."""
    ho, wo = h // k, w // k
    hw = jnp.arange(h * w)
    src_h, src_w = hw // w, hw % w
    ow = jnp.arange(ho * wo)
    dst_h, dst_w = ow // wo, ow % wo
    match = ((src_h[None, :] // k == dst_h[:, None])
             & (src_w[None, :] // k == dst_w[:, None]))
    return match.astype(jnp.float32) / float(k * k)


def _shift_matrices(h, w):
    """(9*H*W, H*W) stack of 0/1 spatial-shift matrices for a 3x3 conv, pad=1.

    Row block `tap` (tap = kh*3 + kw), left-multiplied with a flattened
    (H*W, C) image, yields the (kh-1, kw-1)-shifted image with the zero
    padding absorbed -- the conv becomes matmuls only (no in-kernel slicing).
    """
    p = h * w
    pos = jnp.arange(p)
    ph, pw = pos // w, pos % w
    q = jnp.arange(p)
    mats = []
    for kh in range(3):
        for kw in range(3):
            sh, sw = ph + kh - 1, pw + kw - 1
            valid = (sh >= 0) & (sh < h) & (sw >= 0) & (sw < w)
            src = jnp.where(valid, sh * w + sw, -1)
            mats.append((q[None, :] == src[:, None]).astype(jnp.float32))
    return jnp.concatenate(mats, axis=0)


# ---------------------------------------------------------------------------
# Kernel
# ---------------------------------------------------------------------------
def _shift_conv(x, sh, w_ref, p):
    """3x3 conv over a p-position grid via shift-matrix matmuls.

    x: (p, CinP) bf16, sh: (9p, p) bf16 stacked 0/1 shift matrices,
    w_ref: (9, CinP, CoutP) bf16.  Returns f32 (p, CoutP).
    """
    # sh rows select single rows of x (or zero), so the bf16 result is exact.
    t = jnp.dot(sh, x, preferred_element_type=jnp.float32).astype(jnp.bfloat16)
    acc = jnp.zeros((p, w_ref.shape[-1]), jnp.float32)
    for tap in range(9):
        acc = acc + jnp.dot(t[tap * p:(tap + 1) * p, :], w_ref[tap],
                            preferred_element_type=jnp.float32)
    return acc


def _fused_kernel(*refs, chunk, hw, p2, p3):
    """Whole DeepHSNet forward for `chunk` images (one grid step)."""
    if p3 > 1:
        (x_ref, w1_ref, b1_ref, pool1_ref, bn1_ref,
         sh2_ref, w2_ref, b2_ref, pool2_ref, bn2_ref,
         sh3_ref, w3_ref, b3_ref, bn3_ref,
         bnfc_ref, lw_ref, lb_ref, o_ref) = refs
    else:
        (x_ref, w1_ref, b1_ref, pool1_ref, bn1_ref,
         sh2_ref, w2_ref, b2_ref, pool2_ref, bn2_ref,
         w3_ref, b3_ref, bn3_ref,
         bnfc_ref, lw_ref, lb_ref, o_ref) = refs
        sh3_ref = None

    f32, bf16 = jnp.float32, jnp.bfloat16

    # Small broadcast constants: load once, hoisted out of the per-image loop.
    b1, b2, b3 = b1_ref[...], b2_ref[...], b3_ref[...]
    bn1, bn2, bn3, bnfc = bn1_ref[...], bn2_ref[...], bn3_ref[...], bnfc_ref[...]
    bn1_s, bn1_t = bn1[0:1, :], bn1[1:2, :]
    bn2_s, bn2_t = bn2[0:1, :], bn2[1:2, :]
    bn3_s, bn3_t = bn3[0:1, :], bn3[1:2, :]
    bnfc_s, bnfc_t = bnfc[0:1, :], bnfc[1:2, :]
    pool1, pool2 = pool1_ref[...], pool2_ref[...]
    sh2 = sh2_ref[...]
    lw, lb = lw_ref[...], lb_ref[...]

    # ---- Block 1: ONE im2col matmul for the whole image chunk --------------
    # (chunk*H*W, 9*Cin pad 128) @ (9*Cin pad 128, 25 pad 128); M = chunk*H*W.
    xcol = x_ref[...].reshape(chunk * hw, x_ref.shape[-1])
    y1 = jnp.dot(xcol, w1_ref[...], preferred_element_type=f32)
    y1 = jnp.maximum(y1 + b1, 0.0).astype(bf16)               # bias + ReLU

    for i in range(chunk):                                     # static unroll
        # AvgPool2d(4) as a tiny pool-matrix matmul, then folded BN2d (eval).
        z1 = jnp.dot(pool1, y1[i * hw:(i + 1) * hw, :],
                     preferred_element_type=f32)               # (p2, C1p)
        x2 = (z1 * bn1_s + bn1_t).astype(bf16)

        # Block 2: folded 3x3 conv via shift-matrix matmuls + ReLU + pool + BN.
        a2 = _shift_conv(x2, sh2, w2_ref, p2)
        y2 = jnp.maximum(a2 + b2, 0.0).astype(bf16)
        z2 = jnp.dot(pool2, y2, preferred_element_type=f32)    # (p3, C2p)
        x3 = (z2 * bn2_s + bn2_t).astype(bf16)

        # Block 3: folded 3x3 conv; at 1x1 spatial only the center tap
        # touches real data, so emit a single matmul.
        if p3 == 1:
            a3 = jnp.dot(x3, w3_ref[0], preferred_element_type=f32)
        else:
            a3 = _shift_conv(x3, sh3_ref[...], w3_ref, p3)
        y3 = jnp.maximum(a3 + b3, 0.0)                         # (p3, C3p) f32

        # BN2d (eval) is per-channel affine -> commutes with the spatial mean.
        g = jnp.mean(y3, axis=0, keepdims=True)                # AdaptiveAvgPool2d((1,1))
        g = g * bn3_s + bn3_t                                  # BatchNorm2d(50)
        g = jax.nn.sigmoid(g)                                  # fc: Sigmoid
        # Padded lanes carry sigmoid(0)=0.5; they are killed both by the
        # zero-padded BN1d scale and by the zero rows of lw.
        g = g * bnfc_s + bnfc_t                                # fc: BatchNorm1d(50)
        o_ref[i] = jnp.dot(g.astype(bf16), lw,
                           preferred_element_type=f32) + lb    # fc: Linear


# ---------------------------------------------------------------------------
# Wrapper (layout plumbing + the single fused pallas_call)
# ---------------------------------------------------------------------------
def _full_spec(a):
    """BlockSpec covering the whole (constant) array, broadcast over the grid."""
    if a.ndim == 2:
        return pl.BlockSpec(a.shape, lambda i: (0, 0))
    return pl.BlockSpec(a.shape, lambda i: (0, 0, 0))


def deephs_net_forward(x_nchw, params, meta_data=None):
    """DeepHSNet.forward: (B, num_channels, H, W) -> (B, num_classes)."""
    b1p, b2p, b3p = params["blocks"]
    fcp = params["fc"]
    num_classes = params["num_classes"]
    k1p = params["k1p"]

    x = jnp.transpose(x_nchw, (0, 2, 3, 1)).astype(jnp.float32)    # NCHW -> NHWC
    B, H, W, C = x.shape
    assert C == params["num_channels"]
    assert H >= 16 and W >= 16, "two AvgPool2d(4) stages need >= 16x16 input"
    HW = H * W
    H2, W2 = H // 4, W // 4
    H3, W3 = H2 // 4, W2 // 4
    P2, P3 = H2 * W2, H3 * W3

    # Host-side im2col for block 1 (layout plumbing only): the folded grouped
    # 3x3 + 1x1 convs become ONE lane-dense matmul inside the kernel.
    xpad = jnp.pad(x, ((0, 0), (1, 1), (1, 1), (0, 0)))
    cols = [xpad[:, kh:kh + H, kw:kw + W, :] for kh in range(3) for kw in range(3)]
    xcol = jnp.concatenate(cols, axis=-1)                           # (B,H,W,9C), tap-major
    xcol = jnp.pad(xcol, ((0, 0), (0, 0), (0, 0), (0, k1p - 9 * C)))
    xcol = xcol.reshape(B, HW, k1p).astype(jnp.bfloat16)

    # Pooling / spatial-shift matrices (constants, tiny at these sizes).
    pool1 = _avgpool_matrix(H, W, 4).astype(jnp.bfloat16)           # (P2, H*W)
    pool2 = _avgpool_matrix(H2, W2, 4).astype(jnp.bfloat16)         # (P3, P2)
    shift2 = _shift_matrices(H2, W2).astype(jnp.bfloat16)           # (9*P2, P2)

    # Batch chunking: fold images into the matmul M dimension; keep >= 2
    # "parallel" grid steps when possible so v7x's two TensorCores share work.
    steps, chunk = 1, B
    while chunk % 2 == 0 and (steps < 2 or chunk > 32):
        chunk //= 2
        steps *= 2

    ncp = fcp["lw"].shape[-1]
    operands = [xcol, b1p["w"], b1p["b"], pool1, b1p["bn"],
                shift2, b2p["w"], b2p["b"], pool2, b2p["bn"]]
    in_specs = [pl.BlockSpec((chunk, HW, k1p), lambda i: (i, 0, 0))]
    in_specs += [_full_spec(a) for a in operands[1:]]
    if P3 > 1:
        shift3 = _shift_matrices(H3, W3).astype(jnp.bfloat16)       # (9*P3, P3)
        operands.append(shift3)
        in_specs.append(_full_spec(shift3))
        w3 = b3p["w"]
    else:
        w3 = b3p["w"][4:5]        # 1x1 spatial: only the center tap sees data
    tail = [w3, b3p["b"], b3p["bn"], fcp["bn"], fcp["lw"], fcp["lb"]]
    operands += tail
    in_specs += [_full_spec(a) for a in tail]

    kernel = functools.partial(_fused_kernel, chunk=chunk, hw=HW, p2=P2, p3=P3)
    out = pl.pallas_call(
        kernel,
        out_shape=jax.ShapeDtypeStruct((B, 1, ncp), jnp.float32),
        grid=(steps,),
        in_specs=in_specs,
        out_specs=pl.BlockSpec((chunk, 1, ncp), lambda i: (i, 0, 0)),
        compiler_params=pltpu.CompilerParams(dimension_semantics=("parallel",)),
    )(*operands)
    return out.reshape(B, ncp)[:, :num_classes]


# ---------------------------------------------------------------------------
# Deterministic parameter initialization (shapes follow the PyTorch module)
# ---------------------------------------------------------------------------
def _fold_bn(c, cpad):
    """Fresh-module BatchNorm (gamma=1, beta=0, mean=0, var=1), eval mode.

    Returns a (2, cpad) f32 array: row 0 = scale, row 1 = shift; padded lanes
    are zero so they kill any garbage (e.g. sigmoid(0)=0.5 in the head).
    """
    gamma = jnp.ones((c,), jnp.float32)
    beta = jnp.zeros((c,), jnp.float32)
    mean = jnp.zeros((c,), jnp.float32)
    var = jnp.ones((c,), jnp.float32)
    scale = gamma / jnp.sqrt(var + _EPS)
    shift = beta - mean * scale
    scale = jnp.pad(scale, (0, cpad - c))
    shift = jnp.pad(shift, (0, cpad - c))
    return jnp.stack([scale, shift], axis=0)


def init_deephs_params(key, num_channels, num_classes):
    m = _KC
    dims = [(num_channels, 25), (25, 30), (30, 50)]
    k1p = _round_up(9 * num_channels, _LANE)
    blocks = []
    for idx, (cin, cout) in enumerate(dims):
        cout_pad = _round_up(cout, _LANE)
        key, k1, k2, k3, k4 = jax.random.split(key, 5)
        # PyTorch layouts:
        #   grouped 3x3: (cin*m, 1, 3, 3), output channel index = c*m + mult
        #   pointwise 1x1: (cout, cin*m, 1, 1)
        dw_w = jax.random.normal(k1, (cin * m, 1, 3, 3), jnp.float32) * (2.0 / 9.0) ** 0.5
        dw_b = jax.random.normal(k2, (cin * m,), jnp.float32) * 0.01
        pw_w = jax.random.normal(k3, (cout, cin * m, 1, 1), jnp.float32) * (2.0 / (cin * m)) ** 0.5
        pw_b = jax.random.normal(k4, (cout,), jnp.float32) * 0.01
        # Fold depthwise into pointwise (both linear; ReLU only comes after):
        #   W_eff[t, c, o] = sum_mult dw[c, mult, t] * pw[o, c, mult]
        #   b_eff[o]       = pw_b[o] + sum_{c,mult} dw_b[c, mult] * pw[o, c, mult]
        dw = dw_w.reshape(cin, m, 9)
        pw = pw_w[:, :, 0, 0].reshape(cout, cin, m)
        w_eff = jnp.einsum("cmt,ocm->tco", dw, pw)                   # (9, cin, cout)
        b_eff = pw_b + jnp.einsum("cm,ocm->o", dw_b.reshape(cin, m), pw)
        if idx == 0:
            # im2col order for block 1: row index = tap*cin + c.
            w = jnp.pad(w_eff.reshape(9 * cin, cout),
                        ((0, k1p - 9 * cin), (0, cout_pad - cout)))
        else:
            cin_pad = _round_up(cin, _LANE)
            w = jnp.pad(w_eff, ((0, 0), (0, cin_pad - cin), (0, cout_pad - cout)))
        blocks.append(dict(
            w=w.astype(jnp.bfloat16),
            b=jnp.pad(b_eff, (0, cout_pad - cout))[None, :].astype(jnp.float32),
            bn=_fold_bn(cout, cout_pad)))

    feat_pad = _round_up(50, _LANE)
    ncls_pad = _round_up(num_classes, _LANE)
    key, k1, k2 = jax.random.split(key, 3)
    lin_w = jax.random.normal(k1, (num_classes, 50), jnp.float32) * 0.001   # PyTorch layout
    lin_b = jax.random.normal(k2, (num_classes,), jnp.float32) * 0.01
    lw = jnp.pad(lin_w.T, ((0, feat_pad - 50), (0, ncls_pad - num_classes)))
    lb = jnp.pad(lin_b, (0, ncls_pad - num_classes))[None, :]
    fc = dict(bn=_fold_bn(50, feat_pad),
              lw=lw.astype(jnp.bfloat16),
              lb=lb.astype(jnp.float32))
    return dict(blocks=blocks, fc=fc, num_classes=num_classes,
                num_channels=num_channels, k1p=k1p)


if __name__ == "__main__":
    num_channels, num_classes = 4, 5
    key = jax.random.PRNGKey(0)
    kx, kparam = jax.random.split(key)
    # Matches the PyTorch input convention: NCHW.
    x = jax.random.normal(kx, (2, num_channels, 16, 16), jnp.float32)
    params = init_deephs_params(kparam, num_channels, num_classes)
    fwd = jax.jit(lambda xi: deephs_net_forward(xi, params))
    out = jax.block_until_ready(fwd(x))
    assert out.shape == (2, num_classes), out.shape
    assert bool(jnp.all(jnp.isfinite(out)))
    print("KERNEL_OK")
</pallas_src>

<mosaic_0001>
module attributes {stable_mosaic.version = 11 : i64} {
  func.func @_fused_kernel(%arg0: i32, %arg1: memref<1x256x128xbf16, #tpu.memory_space<vmem>>, %arg2: memref<128x128xbf16, #tpu.memory_space<vmem>>, %arg3: memref<1x128xf32, #tpu.memory_space<vmem>>, %arg4: memref<16x256xbf16, #tpu.memory_space<vmem>>, %arg5: memref<2x128xf32, #tpu.memory_space<vmem>>, %arg6: memref<144x16xbf16, #tpu.memory_space<vmem>>, %arg7: memref<9x128x128xbf16, #tpu.memory_space<vmem>>, %arg8: memref<1x128xf32, #tpu.memory_space<vmem>>, %arg9: memref<1x16xbf16, #tpu.memory_space<vmem>>, %arg10: memref<2x128xf32, #tpu.memory_space<vmem>>, %arg11: memref<1x128x128xbf16, #tpu.memory_space<vmem>>, %arg12: memref<1x128xf32, #tpu.memory_space<vmem>>, %arg13: memref<2x128xf32, #tpu.memory_space<vmem>>, %arg14: memref<2x128xf32, #tpu.memory_space<vmem>>, %arg15: memref<128x128xbf16, #tpu.memory_space<vmem>>, %arg16: memref<1x128xf32, #tpu.memory_space<vmem>>, %arg17: memref<1x1x128xf32, #tpu.memory_space<vmem>>) attributes {dimension_semantics = [#tpu.dimension_semantics<parallel>], iteration_bounds = array<i64: 2>, scalar_prefetch = 0 : i64, scratch_operands = 0 : i64, tpu.core_type = #tpu.core_type<tc>, window_params = [{transform_indices = @transform_0, window_bounds = array<i64: 1, 256, 128>}, {pipeline_mode = #tpu.pipeline_mode<synchronous>, transform_indices = @transform_1, window_bounds = array<i64: 128, 128>}, {pipeline_mode = #tpu.pipeline_mode<synchronous>, transform_indices = @transform_2, window_bounds = array<i64: 1, 128>}, {pipeline_mode = #tpu.pipeline_mode<synchronous>, transform_indices = @transform_3, window_bounds = array<i64: 16, 256>}, {pipeline_mode = #tpu.pipeline_mode<synchronous>, transform_indices = @transform_4, window_bounds = array<i64: 2, 128>}, {pipeline_mode = #tpu.pipeline_mode<synchronous>, transform_indices = @transform_5, window_bounds = array<i64: 144, 16>}, {pipeline_mode = #tpu.pipeline_mode<synchronous>, transform_indices = @transform_6, window_bounds = array<i64: 9, 128, 128>}, {pipeline_mode = #tpu.pipeline_mode<synchronous>, transform_indices = @transform_7, window_bounds = array<i64: 1, 128>}, {pipeline_mode = #tpu.pipeline_mode<synchronous>, transform_indices = @transform_8, window_bounds = array<i64: 1, 16>}, {pipeline_mode = #tpu.pipeline_mode<synchronous>, transform_indices = @transform_9, window_bounds = array<i64: 2, 128>}, {pipeline_mode = #tpu.pipeline_mode<synchronous>, transform_indices = @transform_10, window_bounds = array<i64: 1, 128, 128>}, {pipeline_mode = #tpu.pipeline_mode<synchronous>, transform_indices = @transform_11, window_bounds = array<i64: 1, 128>}, {pipeline_mode = #tpu.pipeline_mode<synchronous>, transform_indices = @transform_12, window_bounds = array<i64: 2, 128>}, {pipeline_mode = #tpu.pipeline_mode<synchronous>, transform_indices = @transform_13, window_bounds = array<i64: 2, 128>}, {pipeline_mode = #tpu.pipeline_mode<synchronous>, transform_indices = @transform_14, window_bounds = array<i64: 128, 128>}, {pipeline_mode = #tpu.pipeline_mode<synchronous>, transform_indices = @transform_15, window_bounds = array<i64: 1, 128>}, {transform_indices = @transform_16, window_bounds = array<i64: 1, 1, 128>}]} {
    %c0 = arith.constant 0 : index
    %c0_0 = arith.constant 0 : index
    %0 = vector.load %arg3[%c0, %c0_0] : memref<1x128xf32, #tpu.memory_space<vmem>>, vector<1x128xf32>
    %c0_1 = arith.constant 0 : index
    %c0_2 = arith.constant 0 : index
    %1 = vector.load %arg8[%c0_1, %c0_2] : memref<1x128xf32, #tpu.memory_space<vmem>>, vector<1x128xf32>
    %c0_3 = arith.constant 0 : index
    %c0_4 = arith.constant 0 : index
    %2 = vector.load %arg12[%c0_3, %c0_4] : memref<1x128xf32, #tpu.memory_space<vmem>>, vector<1x128xf32>
    %c0_5 = arith.constant 0 : index
    %c0_6 = arith.constant 0 : index
    %3 = vector.load %arg5[%c0_5, %c0_6] : memref<2x128xf32, #tpu.memory_space<vmem>>, vector<2x128xf32>
    %c0_7 = arith.constant 0 : index
    %c0_8 = arith.constant 0 : index
    %4 = vector.load %arg10[%c0_7, %c0_8] : memref<2x128xf32, #tpu.memory_space<vmem>>, vector<2x128xf32>
    %c0_9 = arith.constant 0 : index
    %c0_10 = arith.constant 0 : index
    %5 = vector.load %arg13[%c0_9, %c0_10] : memref<2x128xf32, #tpu.memory_space<vmem>>, vector<2x128xf32>
    %c0_11 = arith.constant 0 : index
    %c0_12 = arith.constant 0 : index
    %6 = vector.load %arg14[%c0_11, %c0_12] : memref<2x128xf32, #tpu.memory_space<vmem>>, vector<2x128xf32>
    %7 = vector.extract_strided_slice %3 {offsets = [0, 0], sizes = [1, 128], strides = [1, 1]} : vector<2x128xf32> to vector<1x128xf32>
    %8 = vector.extract_strided_slice %3 {offsets = [1, 0], sizes = [1, 128], strides = [1, 1]} : vector<2x128xf32> to vector<1x128xf32>
    %9 = vector.extract_strided_slice %4 {offsets = [0, 0], sizes = [1, 128], strides = [1, 1]} : vector<2x128xf32> to vector<1x128xf32>
    %10 = vector.extract_strided_slice %4 {offsets = [1, 0], sizes = [1, 128], strides = [1, 1]} : vector<2x128xf32> to vector<1x128xf32>
    %11 = vector.extract_strided_slice %5 {offsets = [0, 0], sizes = [1, 128], strides = [1, 1]} : vector<2x128xf32> to vector<1x128xf32>
    %12 = vector.extract_strided_slice %5 {offsets = [1, 0], sizes = [1, 128], strides = [1, 1]} : vector<2x128xf32> to vector<1x128xf32>
    %13 = vector.extract_strided_slice %6 {offsets = [0, 0], sizes = [1, 128], strides = [1, 1]} : vector<2x128xf32> to vector<1x128xf32>
    %14 = vector.extract_strided_slice %6 {offsets = [1, 0], sizes = [1, 128], strides = [1, 1]} : vector<2x128xf32> to vector<1x128xf32>
    %c0_13 = arith.constant 0 : index
    %c0_14 = arith.constant 0 : index
    %15 = vector.load %arg4[%c0_13, %c0_14] : memref<16x256xbf16, #tpu.memory_space<vmem>>, vector<16x256xbf16>
    %c0_15 = arith.constant 0 : index
    %c0_16 = arith.constant 0 : index
    %16 = vector.load %arg9[%c0_15, %c0_16] : memref<1x16xbf16, #tpu.memory_space<vmem>>, vector<1x16xbf16>
    %c0_17 = arith.constant 0 : index
    %c0_18 = arith.constant 0 : index
    %17 = vector.load %arg6[%c0_17, %c0_18] : memref<144x16xbf16, #tpu.memory_space<vmem>>, vector<144x16xbf16>
    %c0_19 = arith.constant 0 : index
    %c0_20 = arith.constant 0 : index
    %18 = vector.load %arg15[%c0_19, %c0_20] : memref<128x128xbf16, #tpu.memory_space<vmem>>, vector<128x128xbf16>
    %c0_21 = arith.constant 0 : index
    %c0_22 = arith.constant 0 : index
    %19 = vector.load %arg16[%c0_21, %c0_22] : memref<1x128xf32, #tpu.memory_space<vmem>>, vector<1x128xf32>
    %c0_23 = arith.constant 0 : index
    %c0_24 = arith.constant 0 : index
    %c0_25 = arith.constant 0 : index
    %20 = vector.load %arg1[%c0_23, %c0_24, %c0_25] : memref<1x256x128xbf16, #tpu.memory_space<vmem>>, vector<1x256x128xbf16>
    %21 = vector.shape_cast %20 : vector<1x256x128xbf16> to vector<256x128xbf16>
    %c0_26 = arith.constant 0 : index
    %c0_27 = arith.constant 0 : index
    %22 = vector.load %arg2[%c0_26, %c0_27] : memref<128x128xbf16, #tpu.memory_space<vmem>>, vector<128x128xbf16>
    %cst = arith.constant dense<0.000000e+00> : vector<256x128xf32>
    %23 = tpu.matmul %21, %22, %cst {dimension_numbers = #tpu.dot_dimension_numbers<[1], [0], [0], [1], [0, 0, 1, 1], [], []>} : vector<256x128xbf16>, vector<128x128xbf16>, vector<256x128xf32> -> vector<256x128xf32>
    %24 = vector.broadcast %0 : vector<1x128xf32> to vector<256x128xf32>
    %25 = arith.addf %23, %24 : vector<256x128xf32>
    %cst_28 = arith.constant 0.000000e+00 : f32
    %26 = vector.broadcast %cst_28 : f32 to vector<256x128xf32>
    %27 = arith.maximumf %25, %26 : vector<256x128xf32>
    %28 = arith.truncf %27 : vector<256x128xf32> to vector<256x128xbf16>
    %cst_29 = arith.constant dense<0.000000e+00> : vector<16x128xf32>
    %29 = tpu.matmul %15, %28, %cst_29 {dimension_numbers = #tpu.dot_dimension_numbers<[1], [0], [0], [1], [0, 0, 1, 1], [], []>} : vector<16x256xbf16>, vector<256x128xbf16>, vector<16x128xf32> -> vector<16x128xf32>
    %30 = vector.broadcast %7 : vector<1x128xf32> to vector<16x128xf32>
    %31 = arith.mulf %29, %30 : vector<16x128xf32>
    %32 = vector.broadcast %8 : vector<1x128xf32> to vector<16x128xf32>
    %33 = arith.addf %31, %32 : vector<16x128xf32>
    %34 = arith.truncf %33 : vector<16x128xf32> to vector<16x128xbf16>
    %cst_30 = arith.constant dense<0.000000e+00> : vector<144x128xf32>
    %35 = tpu.matmul %17, %34, %cst_30 {dimension_numbers = #tpu.dot_dimension_numbers<[1], [0], [0], [1], [0, 0, 1, 1], [], []>} : vector<144x16xbf16>, vector<16x128xbf16>, vector<144x128xf32> -> vector<144x128xf32>
    %36 = arith.truncf %35 : vector<144x128xf32> to vector<144x128xbf16>
    %cst_31 = arith.constant 0.000000e+00 : f32
    %37 = vector.broadcast %cst_31 : f32 to vector<16x128xf32>
    %38 = vector.extract_strided_slice %36 {offsets = [0, 0], sizes = [16, 128], strides = [1, 1]} : vector<144x128xbf16> to vector<16x128xbf16>
    %c0_32 = arith.constant 0 : index
    %c0_33 = arith.constant 0 : index
    %c0_34 = arith.constant 0 : index
    %39 = vector.load %arg7[%c0_32, %c0_33, %c0_34] : memref<9x128x128xbf16, #tpu.memory_space<vmem>>, vector<1x128x128xbf16>
    %40 = vector.shape_cast %39 : vector<1x128x128xbf16> to vector<128x128xbf16>
    %cst_35 = arith.constant dense<0.000000e+00> : vector<16x128xf32>
    %41 = tpu.matmul %38, %40, %cst_35 {dimension_numbers = #tpu.dot_dimension_numbers<[1], [0], [0], [1], [0, 0, 1, 1], [], []>} : vector<16x128xbf16>, vector<128x128xbf16>, vector<16x128xf32> -> vector<16x128xf32>
    %42 = arith.addf %37, %41 : vector<16x128xf32>
    %43 = vector.extract_strided_slice %36 {offsets = [16, 0], sizes = [16, 128], strides = [1, 1]} : vector<144x128xbf16> to vector<16x128xbf16>
    %c1 = arith.constant 1 : index
    %c0_36 = arith.constant 0 : index
    %c0_37 = arith.constant 0 : index
    %44 = vector.load %arg7[%c1, %c0_36, %c0_37] : memref<9x128x128xbf16, #tpu.memory_space<vmem>>, vector<1x128x128xbf16>
    %45 = vector.shape_cast %44 : vector<1x128x128xbf16> to vector<128x128xbf16>
    %cst_38 = arith.constant dense<0.000000e+00> : vector<16x128xf32>
    %46 = tpu.matmul %43, %45, %cst_38 {dimension_numbers = #tpu.dot_dimension_numbers<[1], [0], [0], [1], [0, 0, 1, 1], [], []>} : vector<16x128xbf16>, vector<128x128xbf16>, vector<16x128xf32> -> vector<16x128xf32>
    %47 = arith.addf %42, %46 : vector<16x128xf32>
    %48 = vector.extract_strided_slice %36 {offsets = [32, 0], sizes = [16, 128], strides = [1, 1]} : vector<144x128xbf16> to vector<16x128xbf16>
    %c2 = arith.constant 2 : index
    %c0_39 = arith.constant 0 : index
    %c0_40 = arith.constant 0 : index
    %49 = vector.load %arg7[%c2, %c0_39, %c0_40] : memref<9x128x128xbf16, #tpu.memory_space<vmem>>, vector<1x128x128xbf16>
    %50 = vector.shape_cast %49 : vector<1x128x128xbf16> to vector<128x128xbf16>
    %cst_41 = arith.constant dense<0.000000e+00> : vector<16x128xf32>
    %51 = tpu.matmul %48, %50, %cst_41 {dimension_numbers = #tpu.dot_dimension_numbers<[1], [0], [0], [1], [0, 0, 1, 1], [], []>} : vector<16x128xbf16>, vector<128x128xbf16>, vector<16x128xf32> -> vector<16x128xf32>
    %52 = arith.addf %47, %51 : vector<16x128xf32>
    %53 = vector.extract_strided_slice %36 {offsets = [48, 0], sizes = [16, 128], strides = [1, 1]} : vector<144x128xbf16> to vector<16x128xbf16>
    %c3 = arith.constant 3 : index
    %c0_42 = arith.constant 0 : index
    %c0_43 = arith.constant 0 : index
    %54 = vector.load %arg7[%c3, %c0_42, %c0_43] : memref<9x128x128xbf16, #tpu.memory_space<vmem>>, vector<1x128x128xbf16>
    %55 = vector.shape_cast %54 : vector<1x128x128xbf16> to vector<128x128xbf16>
    %cst_44 = arith.constant dense<0.000000e+00> : vector<16x128xf32>
    %56 = tpu.matmul %53, %55, %cst_44 {dimension_numbers = #tpu.dot_dimension_numbers<[1], [0], [0], [1], [0, 0, 1, 1], [], []>} : vector<16x128xbf16>, vector<128x128xbf16>, vector<16x128xf32> -> vector<16x128xf32>
    %57 = arith.addf %52, %56 : vector<16x128xf32>
    %58 = vector.extract_strided_slice %36 {offsets = [64, 0], sizes = [16, 128], strides = [1, 1]} : vector<144x128xbf16> to vector<16x128xbf16>
    %c4 = arith.constant 4 : index
    %c0_45 = arith.constant 0 : index
    %c0_46 = arith.constant 0 : index
    %59 = vector.load %arg7[%c4, %c0_45, %c0_46] : memref<9x128x128xbf16, #tpu.memory_space<vmem>>, vector<1x128x128xbf16>
    %60 = vector.shape_cast %59 : vector<1x128x128xbf16> to vector<128x128xbf16>
    %cst_47 = arith.constant dense<0.000000e+00> : vector<16x128xf32>
    %61 = tpu.matmul %58, %60, %cst_47 {dimension_numbers = #tpu.dot_dimension_numbers<[1], [0], [0], [1], [0, 0, 1, 1], [], []>} : vector<16x128xbf16>, vector<128x128xbf16>, vector<16x128xf32> -> vector<16x128xf32>
    %62 = arith.addf %57, %61 : vector<16x128xf32>
    %63 = vector.extract_strided_slice %36 {offsets = [80, 0], sizes = [16, 128], strides = [1, 1]} : vector<144x128xbf16> to vector<16x128xbf16>
    %c5 = arith.constant 5 : index
    %c0_48 = arith.constant 0 : index
    %c0_49 = arith.constant 0 : index
    %64 = vector.load %arg7[%c5, %c0_48, %c0_49] : memref<9x128x128xbf16, #tpu.memory_space<vmem>>, vector<1x128x128xbf16>
    %65 = vector.shape_cast %64 : vector<1x128x128xbf16> to vector<128x128xbf16>
    %cst_50 = arith.constant dense<0.000000e+00> : vector<16x128xf32>
    %66 = tpu.matmul %63, %65, %cst_50 {dimension_numbers = #tpu.dot_dimension_numbers<[1], [0], [0], [1], [0, 0, 1, 1], [], []>} : vector<16x128xbf16>, vector<128x128xbf16>, vector<16x128xf32> -> vector<16x128xf32>
    %67 = arith.addf %62, %66 : vector<16x128xf32>
    %68 = vector.extract_strided_slice %36 {offsets = [96, 0], sizes = [16, 128], strides = [1, 1]} : vector<144x128xbf16> to vector<16x128xbf16>
    %c6 = arith.constant 6 : index
    %c0_51 = arith.constant 0 : index
    %c0_52 = arith.constant 0 : index
    %69 = vector.load %arg7[%c6, %c0_51, %c0_52] : memref<9x128x128xbf16, #tpu.memory_space<vmem>>, vector<1x128x128xbf16>
    %70 = vector.shape_cast %69 : vector<1x128x128xbf16> to vector<128x128xbf16>
    %cst_53 = arith.constant dense<0.000000e+00> : vector<16x128xf32>
    %71 = tpu.matmul %68, %70, %cst_53 {dimension_numbers = #tpu.dot_dimension_numbers<[1], [0], [0], [1], [0, 0, 1, 1], [], []>} : vector<16x128xbf16>, vector<128x128xbf16>, vector<16x128xf32> -> vector<16x128xf32>
    %72 = arith.addf %67, %71 : vector<16x128xf32>
    %73 = vector.extract_strided_slice %36 {offsets = [112, 0], sizes = [16, 128], strides = [1, 1]} : vector<144x128xbf16> to vector<16x128xbf16>
    %c7 = arith.constant 7 : index
    %c0_54 = arith.constant 0 : index
    %c0_55 = arith.constant 0 : index
    %74 = vector.load %arg7[%c7, %c0_54, %c0_55] : memref<9x128x128xbf16, #tpu.memory_space<vmem>>, vector<1x128x128xbf16>
    %75 = vector.shape_cast %74 : vector<1x128x128xbf16> to vector<128x128xbf16>
    %cst_56 = arith.constant dense<0.000000e+00> : vector<16x128xf32>
    %76 = tpu.matmul %73, %75, %cst_56 {dimension_numbers = #tpu.dot_dimension_numbers<[1], [0], [0], [1], [0, 0, 1, 1], [], []>} : vector<16x128xbf16>, vector<128x128xbf16>, vector<16x128xf32> -> vector<16x128xf32>
    %77 = arith.addf %72, %76 : vector<16x128xf32>
    %78 = vector.extract_strided_slice %36 {offsets = [128, 0], sizes = [16, 128], strides = [1, 1]} : vector<144x128xbf16> to vector<16x128xbf16>
    %c8 = arith.constant 8 : index
    %c0_57 = arith.constant 0 : index
    %c0_58 = arith.constant 0 : index
    %79 = vector.load %arg7[%c8, %c0_57, %c0_58] : memref<9x128x128xbf16, #tpu.memory_space<vmem>>, vector<1x128x128xbf16>
    %80 = vector.shape_cast %79 : vector<1x128x128xbf16> to vector<128x128xbf16>
    %cst_59 = arith.constant dense<0.000000e+00> : vector<16x128xf32>
    %81 = tpu.matmul %78, %80, %cst_59 {dimension_numbers = #tpu.dot_dimension_numbers<[1], [0], [0], [1], [0, 0, 1, 1], [], []>} : vector<16x128xbf16>, vector<128x128xbf16>, vector<16x128xf32> -> vector<16x128xf32>
    %82 = arith.addf %77, %81 : vector<16x128xf32>
    %83 = vector.broadcast %1 : vector<1x128xf32> to vector<16x128xf32>
    %84 = arith.addf %82, %83 : vector<16x128xf32>
    %cst_60 = arith.constant 0.000000e+00 : f32
    %85 = vector.broadcast %cst_60 : f32 to vector<16x128xf32>
    %86 = arith.maximumf %84, %85 : vector<16x128xf32>
    %87 = arith.truncf %86 : vector<16x128xf32> to vector<16x128xbf16>
    %cst_61 = arith.constant dense<0.000000e+00> : vector<1x128xf32>
    %88 = tpu.matmul %16, %87, %cst_61 {dimension_numbers = #tpu.dot_dimension_numbers<[1], [0], [0], [1], [0, 0, 1, 1], [], []>} : vector<1x16xbf16>, vector<16x128xbf16>, vector<1x128xf32> -> vector<1x128xf32>
    %89 = arith.mulf %88, %9 : vector<1x128xf32>
    %90 = arith.addf %89, %10 : vector<1x128xf32>
    %91 = arith.truncf %90 : vector<1x128xf32> to vector<1x128xbf16>
    %c0_62 = arith.constant 0 : index
    %c0_63 = arith.constant 0 : index
    %c0_64 = arith.constant 0 : index
    %92 = vector.load %arg11[%c0_62, %c0_63, %c0_64] : memref<1x128x128xbf16, #tpu.memory_space<vmem>>, vector<1x128x128xbf16>
    %93 = vector.shape_cast %92 : vector<1x128x128xbf16> to vector<128x128xbf16>
    %cst_65 = arith.constant dense<0.000000e+00> : vector<1x128xf32>
    %94 = tpu.matmul %91, %93, %cst_65 {dimension_numbers = #tpu.dot_dimension_numbers<[1], [0], [0], [1], [0, 0, 1, 1], [], []>} : vector<1x128xbf16>, vector<128x128xbf16>, vector<1x128xf32> -> vector<1x128xf32>
    %95 = arith.addf %94, %2 : vector<1x128xf32>
    %cst_66 = arith.constant 0.000000e+00 : f32
    %96 = vector.broadcast %cst_66 : f32 to vector<1x128xf32>
    %97 = arith.maximumf %95, %96 : vector<1x128xf32>
    %cst_67 = arith.constant dense<0.000000e+00> : vector<128xf32>
    %98 = vector.multi_reduction <add>, %97, %cst_67 [0] : vector<1x128xf32> to vector<128xf32>
    %99 = vector.shape_cast %98 : vector<128xf32> to vector<1x128xf32>
    %cst_68 = arith.constant 1.000000e+00 : f32
    %100 = vector.broadcast %cst_68 : f32 to vector<1x128xf32>
    %101 = arith.divf %99, %100 : vector<1x128xf32>
    %102 = arith.mulf %101, %11 : vector<1x128xf32>
    %103 = arith.addf %102, %12 : vector<1x128xf32>
    %104 = arith.negf %103 : vector<1x128xf32>
    %105 = math.exp %104 : vector<1x128xf32>
    %cst_69 = arith.constant 1.000000e+00 : f32
    %106 = vector.broadcast %cst_69 : f32 to vector<1x128xf32>
    %107 = arith.addf %106, %105 : vector<1x128xf32>
    %108 = arith.divf %106, %107 : vector<1x128xf32>
    %109 = arith.mulf %108, %13 : vector<1x128xf32>
    %110 = arith.addf %109, %14 : vector<1x128xf32>
    %111 = arith.truncf %110 : vector<1x128xf32> to vector<1x128xbf16>
    %cst_70 = arith.constant dense<0.000000e+00> : vector<1x128xf32>
    %112 = tpu.matmul %111, %18, %cst_70 {dimension_numbers = #tpu.dot_dimension_numbers<[1], [0], [0], [1], [0, 0, 1, 1], [], []>} : vector<1x128xbf16>, vector<128x128xbf16>, vector<1x128xf32> -> vector<1x128xf32>
    %113 = arith.addf %112, %19 : vector<1x128xf32>
    %c0_71 = arith.constant 0 : index
    %c0_72 = arith.constant 0 : index
    %c0_73 = arith.constant 0 : index
    %114 = vector.load %arg17[%c0_71, %c0_72, %c0_73] : memref<1x1x128xf32, #tpu.memory_space<vmem>>, vector<1x1x128xf32>
    %115 = vector.shape_cast %114 : vector<1x1x128xf32> to vector<1x128xf32>
    %116 = vector.shape_cast %113 : vector<1x128xf32> to vector<1x1x128xf32>
    tpu.vector_store %arg17[%c0_71, %c0_72, %c0_73], %116 {strides = array<i32>} : memref<1x1x128xf32, #tpu.memory_space<vmem>>, vector<1x1x128xf32>,
    return
  }
  func.func @transform_0(%arg0: i32) -> (i32, i32, i32) {
    %c0_i32 = arith.constant 0 : i32
    %c0_i32_0 = arith.constant 0 : i32
    %c0_i32_1 = arith.constant 0 : i32
    return %arg0, %c0_i32, %c0_i32_0 : i32, i32, i32
  }
  func.func @transform_1(%arg0: i32) -> (i32, i32) {
    %c0_i32 = arith.constant 0 : i32
    %c0_i32_0 = arith.constant 0 : i32
    %c0_i32_1 = arith.constant 0 : i32
    return %c0_i32, %c0_i32_0 : i32, i32
  }
  func.func @transform_2(%arg0: i32) -> (i32, i32) {
    %c0_i32 = arith.constant 0 : i32
    %c0_i32_0 = arith.constant 0 : i32
    %c0_i32_1 = arith.constant 0 : i32
    return %c0_i32, %c0_i32_0 : i32, i32
  }
  func.func @transform_3(%arg0: i32) -> (i32, i32) {
    %c0_i32 = arith.constant 0 : i32
    %c0_i32_0 = arith.constant 0 : i32
    %c0_i32_1 = arith.constant 0 : i32
    return %c0_i32, %c0_i32_0 : i32, i32
  }
  func.func @transform_4(%arg0: i32) -> (i32, i32) {
    %c0_i32 = arith.constant 0 : i32
    %c0_i32_0 = arith.constant 0 : i32
    %c0_i32_1 = arith.constant 0 : i32
    return %c0_i32, %c0_i32_0 : i32, i32
  }
  func.func @transform_5(%arg0: i32) -> (i32, i32) {
    %c0_i32 = arith.constant 0 : i32
    %c0_i32_0 = arith.constant 0 : i32
    %c0_i32_1 = arith.constant 0 : i32
    return %c0_i32, %c0_i32_0 : i32, i32
  }
  func.func @transform_6(%arg0: i32) -> (i32, i32, i32) {
    %c0_i32 = arith.constant 0 : i32
    %c0_i32_0 = arith.constant 0 : i32
    %c0_i32_1 = arith.constant 0 : i32
    %c0_i32_2 = arith.constant 0 : i32
    return %c0_i32, %c0_i32_0, %c0_i32_1 : i32, i32, i32
  }
  func.func @transform_7(%arg0: i32) -> (i32, i32) {
    %c0_i32 = arith.constant 0 : i32
    %c0_i32_0 = arith.constant 0 : i32
    %c0_i32_1 = arith.constant 0 : i32
    return %c0_i32, %c0_i32_0 : i32, i32
  }
  func.func @transform_8(%arg0: i32) -> (i32, i32) {
    %c0_i32 = arith.constant 0 : i32
    %c0_i32_0 = arith.constant 0 : i32
    %c0_i32_1 = arith.constant 0 : i32
    return %c0_i32, %c0_i32_0 : i32, i32
  }
  func.func @transform_9(%arg0: i32) -> (i32, i32) {
    %c0_i32 = arith.constant 0 : i32
    %c0_i32_0 = arith.constant 0 : i32
    %c0_i32_1 = arith.constant 0 : i32
    return %c0_i32, %c0_i32_0 : i32, i32
  }
  func.func @transform_10(%arg0: i32) -> (i32, i32, i32) {
    %c0_i32 = arith.constant 0 : i32
    %c0_i32_0 = arith.constant 0 : i32
    %c0_i32_1 = arith.constant 0 : i32
    %c0_i32_2 = arith.constant 0 : i32
    return %c0_i32, %c0_i32_0, %c0_i32_1 : i32, i32, i32
  }
  func.func @transform_11(%arg0: i32) -> (i32, i32) {
    %c0_i32 = arith.constant 0 : i32
    %c0_i32_0 = arith.constant 0 : i32
    %c0_i32_1 = arith.constant 0 : i32
    return %c0_i32, %c0_i32_0 : i32, i32
  }
  func.func @transform_12(%arg0: i32) -> (i32, i32) {
    %c0_i32 = arith.constant 0 : i32
    %c0_i32_0 = arith.constant 0 : i32
    %c0_i32_1 = arith.constant 0 : i32
    return %c0_i32, %c0_i32_0 : i32, i32
  }
  func.func @transform_13(%arg0: i32) -> (i32, i32) {
    %c0_i32 = arith.constant 0 : i32
    %c0_i32_0 = arith.constant 0 : i32
    %c0_i32_1 = arith.constant 0 : i32
    return %c0_i32, %c0_i32_0 : i32, i32
  }
  func.func @transform_14(%arg0: i32) -> (i32, i32) {
    %c0_i32 = arith.constant 0 : i32
    %c0_i32_0 = arith.constant 0 : i32
    %c0_i32_1 = arith.constant 0 : i32
    return %c0_i32, %c0_i32_0 : i32, i32
  }
  func.func @transform_15(%arg0: i32) -> (i32, i32) {
    %c0_i32 = arith.constant 0 : i32
    %c0_i32_0 = arith.constant 0 : i32
    %c0_i32_1 = arith.constant 0 : i32
    return %c0_i32, %c0_i32_0 : i32, i32
  }
  func.func @transform_16(%arg0: i32) -> (i32, i32, i32) {
    %c0_i32 = arith.constant 0 : i32
    %c0_i32_0 = arith.constant 0 : i32
    %c0_i32_1 = arith.constant 0 : i32
    return %arg0, %c0_i32, %c0_i32_0 : i32, i32, i32
  }
}

</mosaic_0001>

<bundles_post_ra>
// kernel: _lambda_.1
= control target key start
LH: loop header
LB: loop body
LE: loop exit
PB: predicated region body
PF: predicated region fallthrough
CT: control target
= control target key end

     0   :  { %s4302_s0 = inlined_call_operand.vmem [shape: bf16[2,256,128], index: 0, kind: input, shape index: {}]   ;;  %s4303_s1 = inlined_call_operand.vmem [shape: bf16[128,128], index: 1, kind: input, shape index: {}]   ;;  %s4304_s2 = inlined_call_operand.vmem [shape: f32[1,128], index: 2, kind: input, shape index: {}]   ;;  %s4305_s3 = inlined_call_operand.vmem [shape: bf16[16,256], index: 3, kind: input, shape index: {}]   ;;  %s4306_s4 = inlined_call_operand.vmem [shape: f32[2,128], index: 4, kind: input, shape index: {}]   ;;  %s4307_s5 = inlined_call_operand.vmem [shape: bf16[144,16], index: 5, kind: input, shape index: {}]   ;;  %s4308_s6 = inlined_call_operand.vmem [shape: bf16[9,128,128], index: 6, kind: input, shape index: {}]   ;;  %s4309_s7 = inlined_call_operand.vmem [shape: f32[1,128], index: 7, kind: input, shape index: {}]   ;;  %s4310_s8 = inlined_call_operand.vmem [shape: bf16[1,16], index: 8, kind: input, shape index: {}]   ;;  %s4311_s9 = inlined_call_operand.vmem [shape: f32[2,128], index: 9, kind: input, shape index: {}]   ;;  %s4312_s10 = inlined_call_operand.vmem [shape: bf16[1,128,128], index: 10, kind: input, shape index: {}]   ;;  %s4313_s11 = inlined_call_operand.vmem [shape: f32[1,128], index: 11, kind: input, shape index: {}]   ;;  %s4314_s12 = inlined_call_operand.vmem [shape: f32[2,128], index: 12, kind: input, shape index: {}, may-alias: {12,13}]   ;;  %s4315_s13 = inlined_call_operand.vmem [shape: f32[2,128], index: 13, kind: input, shape index: {}, may-alias: {12,13}]   ;;  %s4316_s14 = inlined_call_operand.vmem [shape: bf16[128,128], index: 14, kind: input, shape index: {}]   ;;  %s4317_s15 = inlined_call_operand.vmem [shape: f32[1,128], index: 15, kind: input, shape index: {}]   ;;  %s4318_s16 = inlined_call_operand.hbm [shape: f32[2,1,128], index: 16, kind: output, shape index: {}]  }
   0x1   :  { %4325 = sst [smem:[#allocation11_spill]] %s4302_s0 }
   0x2   :  { %21 = vsyncpa [#allocation3], 0 }
   0x3   :  { %23 = vsyncpa [#allocation3 + $0x1], 0  ;;  %s3594_s21 = smov 0   ;;  %s3596_s22 = smov 0  }
   0x4   :  { %s3598_s23 = smov 0   ;;  %s3600_s24 = smov 0  }
   0x5 LB: > { %4326 = sst [smem:[#allocation5_spill]] %s3492_s21  ;;  %s3615_s25 = sadd.s32 4294967295, %s3504_s24   ;;  %s3504_s24 = sphi %s3600_s24, %s4338_s24   ;;  %s3500_s23 = sphi %s3598_s23, %s4340_s23   ;;  %s3496_s22 = sphi %s3596_s22, %s4342_s22   ;;  %s3492_s21 = sphi %s3594_s21, %s4341_s21  }
   0x6   : > { %4327 = sst [smem:[#allocation6_spill]] %s3500_s23  ;;  %s2530_s26 = sadd.s32 4294967294, %s3504_s24  }
   0x7   : > { %4328 = sst [smem:[#allocation7_spill]] %s3504_s24  ;;  %s3619_s27 = sadd.s32 1, %s3504_s24  }
   0x8   : > { %4329 = sst [smem:[#allocation8_spill]] %s3619_s27  ;;  %s377_s28 = sadd.s32 1, %s3500_s23 }
   0x9   : > { %s374_s29 = ssub.s32 %s3504_s24, %s3619_s27  ;;  %p387_p0 = scmp.ne.s32.totalorder %s3500_s23, %s3496_s22 }
   0xa   : > { %p375_p1 = scmp.eq.s32.totalorder %s374_s29, 0  ;;  %p388_p2 = scmp.eq.s32.totalorder %s3615_s25, 1 }
   0xb   : > { %p393_p3 = scmp.ne.s32.totalorder %s3496_s22, %s3492_s21  ;;  %p394_p4 = scmp.eq.s32.totalorder %s2530_s26, 1 }
   0xc   : > { %s3630_s30 = scalar_select %p375_p1, %s3500_s23, %s377_s28  }
   0xd   : > { %p3632_p5 = por %p388_p2, %p387_p0  ;;  %p3636_p6 = por %p394_p4, %p393_p3 }
   0xe   : > { %4330 = sst [smem:[#allocation9_spill]] %s3630_s30  ;;  %p2533_p7 = scmp.ge.s32.totalorder %s3504_s24, 1 }
   0xf   : > { %s4332_s17 = scalar_select %p3636_p6, 1, 0 }
  0x10   : > { %p465_p8 = scmp.lt.s32.totalorder %s3504_s24, 3 }
  0x11   : > { %4333 = sst [smem:[#allocation10_spill]] %s4332_s17 }
  0x12   : > { %p466_p9 = pnand %p2533_p7, %p465_p8 }
  0x13   : > { %v3314_v0 = vld [vmem:[%s4303_s1] sm:$0xff] (!%p466_p9)   ;;  %p514_p10 = scmp.lt.s32.totalorder (!%p466_p9), %s3615_s25, 1  ;;  %v3315_v1 = vld [vmem:[%s4303_s1 + $0x8] sm:$0xff] (!%p466_p9)   ;;  %v3316_v2 = vld [vmem:[%s4303_s1 + $0x10] sm:$0xff] (!%p466_p9)   ;;  %s4334_s18 = sld [smem:[#allocation11_spill]] (!%p466_p9)  ;;  %vm3507_vm0 = vmmov (!%p466_p9), 0  }
  0x14   : > { %469 = sbr.rel (%p466_p9) target bundleno = 1838 (0x72e), region = 84  ;;  %2961 = vmatprep.subr.bf16.mxu0 (!%p466_p9), %v3314_v0  ;;  %v3317_v3 = vld [vmem:[%s4303_s1 + $0x18] sm:$0xff] (!%p466_p9)   ;;  %v3318_v5 = vld [vmem:[%s4303_s1 + $0x20] sm:$0xff] (!%p466_p9)   ;;  %v3319_v6 = vld [vmem:[%s4303_s1 + $0x28] sm:$0xff] (!%p466_p9)   ;;  %vm1081_vm1 = vcmask (!%p466_p9), 130048   ;;  %s512_s17 = sand.u32 (!%p466_p9), 1, %s3496_s22  }
  0x15   : > { %2962 = vmatpush3.bf16.msra.mxu0 (!%p466_p9), %v3314_v0  ;;  %v3320_v7 = vld [vmem:[%s4303_s1 + $0x30] sm:$0xff] (!%p466_p9)   ;;  %v3321_v8 = vld [vmem:[%s4303_s1 + $0x38] sm:$0xff] (!%p466_p9)   ;;  %v3340_v24 = vld [vmem:[%s4305_s3 + $0x4] ss:$8 sps:$4 sm:$0xff] (!%p466_p9)   ;;  %s2800_s29 = sshll.u32 (!%p466_p9), %s3615_s25, 4  ;;  %s2463_s27 = scalar_lea.sflag (!%p466_p9), [#allocation3], %s512_s17 }
  0x16   : > { %2963 = vmatprep.subr.bf16.mxu0 (!%p466_p9), %v3315_v1  ;;  %1014 = vmatprep.mubr.bf16.mxu1 (!%p466_p9), %v3340_v24  ;;  %v3695_v25 = vld [vmem:[%s4304_s2] ss:$0 sm:$0xff] (!%p466_p9)  ;;  %s3508_s21 = smov (!%p466_p9), [#allocation2]  }
  0x17   : > { %s3446_s24 = sshll.u32 (!%p466_p9), %s3508_s21, 4  ;;  %s3447_s24 = int_to_ptr.vmem [resolvable:$false] %s3446_s24 }
  0x18   : > { %s3448_s26 = scalar_lea.vmem (!%p466_p9), %s3447_s24, 32 }
  0x19   : > { %2964 = vmatpush3.bf16.msra.mxu0 (!%p466_p9), %v3315_v1 }
  0x1a   : > { %2965 = vmatprep.subr.bf16.mxu0 (!%p466_p9), %v3316_v2 }
  0x1b   : > { %s515_s28 = scalar_select %p514_p10, %s3615_s25, 1 }
  0x1d   : > { %s2803_s23 = sshll.u32 %s515_s28, 7  ;;  %2966 = vmatpush3.bf16.msra.mxu0 %v3316_v2 }
  0x1e   : > { %s3656_s19 = scalar_lea.vmem %s4334_s18, %s2803_s23  ;;  %2967 = vmatprep.subr.bf16.mxu0 %v3317_v3  ;;  %s513_s18 = scalar_lea.vmem [#allocation2], %s512_s17 }
  0x1f   : > { %v3322_v4 = vld [vmem:[%s3656_s19] sm:$0xff]   ;;  %v3323_v9 = vld [vmem:[%s3656_s19 + $0x8] sm:$0xff]   ;;  %v3324_v10 = vld [vmem:[%s3656_s19 + $0x10] sm:$0xff]   ;;  %s2475_s30 = sshll.u32 %s513_s18, 4  ;;  %s4260_s23 = scalar_lea.hbm %s4318_s16, %s2800_s29  ;;  %s4262_s30 = int_to_ptr.vmem [resolvable:$true] %s2475_s30 }
  0x20   : > { %2977 = vmatprep.mubr.bf16.mxu0 %v3322_v4  ;;  %v3325_v11 = vld [vmem:[%s3656_s19 + $0x18] sm:$0xff]   ;;  %v3326_v12 = vld [vmem:[%s3656_s19 + $0x20] sm:$0xff]   ;;  %v3327_v13 = vld [vmem:[%s3656_s19 + $0x28] sm:$0xff]   ;;  %s3442_s25 = scalar_lea.vmem %s4262_s30, 16  ;;  %p3449_p0 = scmp.lt.s32.totalorder %s4262_s30, %s3447_s24 }
  0x21   : > { %2968 = vmatpush3.bf16.msra.mxu0 %v3317_v3  ;;  %v3328_v14 = vld [vmem:[%s3656_s19 + $0x30] sm:$0xff]   ;;  %v3329_v15 = vld [vmem:[%s3656_s19 + $0x38] sm:$0xff]   ;;  %v3330_v16 = vld [vmem:[%s3656_s19 + $0x40] sm:$0xff]   ;;  %p3443_p11 = scmp.ne.s32.totalorder %s4262_s30, %s3442_s25  ;;  %p3450_p1 = scmp.lt.s32.totalorder %s3448_s26, %s3442_s25 }
  0x22   : > { %2969 = vmatprep.subr.bf16.mxu0 %v3318_v5  ;;  %v3331_v17 = vld [vmem:[%s3656_s19 + $0x48] sm:$0xff]   ;;  %v3332_v18 = vld [vmem:[%s3656_s19 + $0x50] sm:$0xff]   ;;  %v3333_v19 = vld [vmem:[%s3656_s19 + $0x58] sm:$0xff]  }
  0x23   : > { %v3334_v20 = vld [vmem:[%s3656_s19 + $0x60] sm:$0xff]   ;;  %v3335_v21 = vld [vmem:[%s3656_s19 + $0x68] sm:$0xff]   ;;  %v3336_v22 = vld [vmem:[%s3656_s19 + $0x70] sm:$0xff]   ;;  %p3444_p12 = pnand %p3443_p11, %p3632_p5  ;;  %p3451_p2 = por %p3450_p1, %p3449_p0 }
  0x24   : > { %v3337_v23 = vld [vmem:[%s3656_s19 + $0x78] sm:$0xff]  }
  0x25   : > { %2970 = vmatpush3.bf16.msra.mxu0 %v3318_v5  ;;  %p3445_p13 = pneg %p3444_p12 }
  0x26   : > { %2971 = vmatprep.subr.bf16.mxu0 %v3319_v6 }
  0x27   : > { %p3452_p3 = pnand %p3451_p2, %p3445_p13 }
  0x29   : > { %2972 = vmatpush3.bf16.msra.mxu0 %v3319_v6 }
  0x2a   : > { %2973 = vmatprep.subr.bf16.mxu0 %v3320_v7 }
  0x2d   : > { %2974 = vmatpush3.bf16.msra.mxu0 %v3320_v7 }
  0x2e   : > { %2975 = vmatprep.subr.bf16.mxu0 %v3321_v8 }
  0x31   : > { %2976 = vmatpush3.bf16.msra.mxu0 %v3321_v8 }
  0x34   : > { %2978 = vmatmul.mubr.bf16.vlgmr.msra.gmra.mrb[0].mxu0 %v3323_v9 }
  0x35   : > { %2981 = vmatprep.mubr.bf16.mxu0 %v3324_v10 }
  0x3c   : > { %2982 = vmatmul.mubr.bf16.gmra.mrb[4].mxu0 %v3325_v11 }
  0x3d   : > { %2985 = vmatprep.mubr.bf16.mxu0 %v3326_v12 }
  0x44   : > { %2986 = vmatmul.mubr.bf16.gmra.mrb[8].mxu0 %v3327_v13 }
  0x45   : > { %2989 = vmatprep.mubr.bf16.mxu0 %v3328_v14 }
  0x4c   : > { %2990 = vmatmul.mubr.bf16.gmra.mrb[12].mxu0 %v3329_v15 }
  0x4d   : > { %2993 = vmatprep.mubr.bf16.mxu0 %v3330_v16 }
  0x54   : > { %2994 = vmatmul.mubr.bf16.gmra.mrb[16].mxu0 %v3331_v17 }
  0x55   : > { %2997 = vmatprep.mubr.bf16.mxu0 %v3332_v18 }
  0x5c   : > { %2998 = vmatmul.mubr.bf16.gmra.mrb[20].mxu0 %v3333_v19 }
  0x5d   : > { %3001 = vmatprep.mubr.bf16.mxu0 %v3334_v20 }
  0x64   : > { %3002 = vmatmul.mubr.bf16.gmra.mrb[24].mxu0 %v3335_v21 }
  0x65   : > { %3005 = vmatprep.mubr.bf16.mxu0 %v3336_v22 }
  0x6c   : > { %3006 = vmatmul.mubr.bf16.gmra.mrb[28].mxu0 %v3337_v23 }
 0x107   : > { %v2979_v26 = vpop.f32.mrb[0].mxu0 }
 0x108   : > { %v806_v27 = vadd.f32 %v2979_v26, %v3695_v25  ;;  %v797_v28 = vpop.f32.mrb[1].mxu0 }
 0x109   : > { %v798_v29 = vadd.f32 %v3695_v25, %v797_v28  ;;  %v2980_v30 = vpop.f32.mrb[2].mxu0 }
 0x10a   : > { %v809_v31 = vadd.f32 %v2980_v30, %v3695_v25  ;;  %v800_v32 = vpop.f32.mrb[3].mxu0  ;;  %v926_v34 = vmax.f32 %v806_v27, 0.0 }
 0x10b   : > { %v801_v33 = vadd.f32 %v3695_v25, %v800_v32  ;;  %v924_v36 = vmax.f32 %v798_v29, 0.0 }
 0x10c   : > { %v927_v35 = vmax.f32 %v809_v31, 0.0 }
 0x10d   : > { %v925_v37 = vmax.f32 %v801_v33, 0.0 }
 0x10e   : > { %v3701_v38 = vpack.c.bf16 %v927_v35, %v926_v34 }
 0x10f   : > { %v2983_v39 = vpop.f32.mrb[4].mxu0  ;;  %v3703_v40 = vpack.c.bf16 %v925_v37, %v924_v36 }
 0x110   : > { %v822_v41 = vadd.f32 %v2983_v39, %v3695_v25  ;;  %v813_v42 = vpop.f32.mrb[5].mxu0 }
 0x111   : > { %v814_v43 = vadd.f32 %v3695_v25, %v813_v42  ;;  %v2984_v44 = vpop.f32.mrb[6].mxu0 }
 0x112   : > { %v825_v45 = vadd.f32 %v2984_v44, %v3695_v25  ;;  %v816_v46 = vpop.f32.mrb[7].mxu0  ;;  %v930_v48 = vmax.f32 %v822_v41, 0.0 }
 0x113   : > { %v817_v47 = vadd.f32 %v3695_v25, %v816_v46  ;;  %v928_v50 = vmax.f32 %v814_v43, 0.0 }
 0x114   : > { %v931_v49 = vmax.f32 %v825_v45, 0.0 }
 0x115   : > { %v929_v51 = vmax.f32 %v817_v47, 0.0 }
 0x116   : > { %v3709_v52 = vpack.c.bf16 %v931_v49, %v930_v48 }
 0x117   : > { %v3711_v53 = vpack.c.bf16 %v929_v51, %v928_v50  ;;  %v2987_v54 = vpop.f32.mrb[8].mxu0 }
 0x118   : > { %v838_v55 = vadd.f32 %v2987_v54, %v3695_v25  ;;  %v829_v56 = vpop.f32.mrb[9].mxu0 }
 0x119   : > { %v830_v57 = vadd.f32 %v3695_v25, %v829_v56  ;;  %v2988_v58 = vpop.f32.mrb[10].mxu0 }
 0x11a   : > { %v841_v59 = vadd.f32 %v2988_v58, %v3695_v25  ;;  %v832_v60 = vpop.f32.mrb[11].mxu0  ;;  %v934_v62 = vmax.f32 %v838_v55, 0.0 }
 0x11b   : > { %v833_v61 = vadd.f32 %v3695_v25, %v832_v60  ;;  %v932_v0 = vmax.f32 %v830_v57, 0.0 }
 0x11c   : > { %v935_v63 = vmax.f32 %v841_v59, 0.0 }
 0x11d   : > { %v933_v1 = vmax.f32 %v833_v61, 0.0 }
 0x11e   : > { %v3717_v2 = vpack.c.bf16 %v935_v63, %v934_v62 }
 0x11f   : > { %v3719_v3 = vpack.c.bf16 %v933_v1, %v932_v0  ;;  %v2991_v4 = vpop.f32.mrb[12].mxu0 }
 0x120   : > { %v854_v5 = vadd.f32 %v2991_v4, %v3695_v25  ;;  %v845_v6 = vpop.f32.mrb[13].mxu0 }
 0x121   : > { %v846_v7 = vadd.f32 %v3695_v25, %v845_v6  ;;  %v2992_v8 = vpop.f32.mrb[14].mxu0 }
 0x122   : > { %v857_v9 = vadd.f32 %v2992_v8, %v3695_v25  ;;  %v848_v10 = vpop.f32.mrb[15].mxu0  ;;  %v938_v12 = vmax.f32 %v854_v5, 0.0 }
 0x123   : > { %v849_v11 = vadd.f32 %v3695_v25, %v848_v10  ;;  %v936_v14 = vmax.f32 %v846_v7, 0.0 }
 0x124   : > { %v939_v13 = vmax.f32 %v857_v9, 0.0 }
 0x125   : > { %v937_v15 = vmax.f32 %v849_v11, 0.0 }
 0x126   : > { %v3725_v16 = vpack.c.bf16 %v939_v13, %v938_v12  ;;  %v3338_v13 = vld [vmem:[%s4305_s3] ss:$8 sps:$4 sm:$0xff]  }
 0x127   : > { %v3727_v17 = vpack.c.bf16 %v937_v15, %v936_v14  ;;  %v2995_v18 = vpop.f32.mrb[16].mxu0  ;;  %v3352_v14 = vld [vmem:[%s4308_s6 + $0x50] sm:$0xff]   ;;  %v3354_v15 = vld [vmem:[%s4308_s6 + $0x58] sm:$0xff]  }
 0x128   : > { %v870_v19 = vadd.f32 %v2995_v18, %v3695_v25  ;;  %v861_v20 = vpop.f32.mrb[17].mxu0  ;;  %v1023_v18 = vlaneseq }
 0x129   : > { %v862_v21 = vadd.f32 %v3695_v25, %v861_v20  ;;  %v2996_v22 = vpop.f32.mrb[18].mxu0 }
 0x12a   : > { %v873_v23 = vadd.f32 %v2996_v22, %v3695_v25  ;;  %v864_v24 = vpop.f32.mrb[19].mxu0  ;;  %v942_v27 = vmax.f32 %v870_v19, 0.0  ;;  %v1024_v19 = vshrl.u32 %v1023_v18, 7 }
 0x12b   : > { %v865_v26 = vadd.f32 %v3695_v25, %v864_v24  ;;  %v940_v29 = vmax.f32 %v862_v21, 0.0  ;;  %v523_v21 = vld [vmem:[%s4306_s4] sm:$0x3] }
 0x12c   : > { %v943_v28 = vmax.f32 %v873_v23, 0.0  ;;  %v1025_v20 = vsub.s32 0, %v1024_v19  ;;  %v1031_v24 = vsub.s32 1, %v1024_v19  ;;  %v3374_v19 = vld [vmem:[%s4308_s6 + $0xa0] sm:$0xff]  }
 0x12d   : > { %v941_v30 = vmax.f32 %v865_v26, 0.0 }
 0x12e   : > { %v965_v31 = vpack.c.bf16 %v943_v28, %v942_v27  ;;  %v1026_v23 = vrot.slane %v523_v21, %v1025_v20  ;;  %v3379_v20 = vld [vmem:[%s4308_s6 + $0xf0] sm:$0xff]  }
 0x12f   : > { %v2999_v32 = vpop.f32.mrb[20].mxu0  ;;  %v964_v33 = vpack.c.bf16 %v941_v30, %v940_v29 }
 0x130   : > { %v886_v34 = vadd.f32 %v2999_v32, %v3695_v25  ;;  %v877_v35 = vpop.f32.mrb[21].mxu0 }
 0x131   : > { %v878_v36 = vadd.f32 %v3695_v25, %v877_v35  ;;  %v3000_v37 = vpop.f32.mrb[22].mxu0  ;;  %2828 = vmatprep.subr.bf16.mxu1 %v964_v33 }
 0x132   : > { %v889_v39 = vadd.f32 %v3000_v37, %v3695_v25  ;;  %v880_v41 = vpop.f32.mrb[23].mxu0  ;;  %2829 = vmatpush3.bf16.msra.mxu1 %v3703_v40  ;;  %v946_v43 = vmax.f32 %v886_v34, 0.0  ;;  %v3341_v37 = vld [vmem:[%s4307_s5] sm:$0xff]  }
 0x133   : > { %v881_v42 = vadd.f32 %v3695_v25, %v880_v41  ;;  %2830 = vmatprep.subr.bf16.mxu1 %v965_v31  ;;  %v944_v45 = vmax.f32 %v878_v36, 0.0  ;;  %v1032_v31 = vrot.slane %v523_v21, %v1031_v24  ;;  %v3355_v41 = vld [vmem:[%s4308_s6 + $0x8] sm:$0xff]  }
 0x134   : > { %v947_v44 = vmax.f32 %v889_v39, 0.0  ;;  %v3353_v39 = vld [vmem:[%s4308_s6] sm:$0xff]   ;;  %v3376_v24 = vld [vmem:[%s4308_s6 + $0xa8] sm:$0xff]  }
 0x135   : > { %v945_v46 = vmax.f32 %v881_v42, 0.0  ;;  %v3342_v42 = vld [vmem:[%s4307_s5 + $0x8] sm:$0xff]  }
 0x136   : > { %v967_v47 = vpack.c.bf16 %v947_v44, %v946_v43  ;;  %2831 = vmatpush3.bf16.msra.mxu1 %v3701_v38  ;;  %v3356_v43 = vld [vmem:[%s4308_s6 + $0x10] sm:$0xff]   ;;  %v3358_v44 = vld [vmem:[%s4308_s6 + $0x18] sm:$0xff]  }
 0x137   : > { %v966_v48 = vpack.c.bf16 %v945_v46, %v944_v45  ;;  %v3003_v49 = vpop.f32.mrb[24].mxu0  ;;  %v3343_v45 = vld [vmem:[%s4307_s5 + $0x10] sm:$0xff]   ;;  %v3359_v46 = vld [vmem:[%s4308_s6 + $0x20] sm:$0xff]  }
 0x138   : > { %v902_v50 = vadd.f32 %v3003_v49, %v3695_v25  ;;  %v893_v51 = vpop.f32.mrb[25].mxu0  ;;  %v3362_v49 = vld [vmem:[%s4308_s6 + $0x30] sm:$0xff]  }
 0x139   : > { %v894_v54 = vadd.f32 %v3695_v25, %v893_v51  ;;  %v3004_v55 = vpop.f32.mrb[26].mxu0  ;;  %2832 = vmatprep.subr.bf16.mxu1 %v966_v48  ;;  %v3344_v48 = vld [vmem:[%s4307_s5 + $0x18] sm:$0xff]   ;;  %v3346_v51 = vld [vmem:[%s4307_s5 + $0x28] sm:$0xff]  }
 0x13a   : > { %v905_v40 = vadd.f32 %v3004_v55, %v3695_v25  ;;  %v896_v56 = vpop.f32.mrb[27].mxu0  ;;  %2833 = vmatpush3.bf16.msra.mxu1 %v3711_v53  ;;  %v950_v58 = vmax.f32 %v902_v50, 0.0  ;;  %v3345_v50 = vld [vmem:[%s4307_s5 + $0x20] sm:$0xff]   ;;  %v3348_v55 = vld [vmem:[%s4307_s5 + $0x38] sm:$0xff]  }
 0x13b   : > { %v897_v57 = vadd.f32 %v3695_v25, %v896_v56  ;;  %2834 = vmatprep.subr.bf16.mxu1 %v967_v47  ;;  %v948_v38 = vmax.f32 %v894_v54, 0.0  ;;  %v3361_v47 = vld [vmem:[%s4308_s6 + $0x28] sm:$0xff]   ;;  %v3347_v54 = vld [vmem:[%s4307_s5 + $0x30] sm:$0xff]   ;;  %v3364_v56 = vld [vmem:[%s4308_s6 + $0x38] sm:$0xff]  }
 0x13c   : > { %v951_v59 = vmax.f32 %v905_v40, 0.0  ;;  %v3349_v40 = vld [vmem:[%s4307_s5 + $0x40] sm:$0xff]  }
 0x13d   : > { %v949_v60 = vmax.f32 %v897_v57, 0.0  ;;  %v3363_v57 = vld [vmem:[%s4308_s6 + $0x70] sm:$0xff]  }
 0x13e   : > { %v969_v61 = vpack.c.bf16 %v951_v59, %v950_v58  ;;  %2835 = vmatpush3.bf16.msra.mxu1 %v3709_v52  ;;  %v3365_v58 = vld [vmem:[%s4308_s6 + $0x78] sm:$0xff]  }
 0x13f   : > { %v968_v62 = vpack.c.bf16 %v949_v60, %v948_v38  ;;  %v3007_v63 = vpop.f32.mrb[28].mxu0 }
 0x140   : > { %v918_v0 = vadd.f32 %v3007_v63, %v3695_v25  ;;  %v909_v1 = vpop.f32.mrb[29].mxu0 }
 0x141   : > { %v910_v4 = vadd.f32 %v3695_v25, %v909_v1  ;;  %v3008_v5 = vpop.f32.mrb[30].mxu0  ;;  %2836 = vmatprep.subr.bf16.mxu1 %v968_v62 }
 0x142   : > { %v921_v53 = vadd.f32 %v3008_v5, %v3695_v25  ;;  %v912_v6 = vpop.f32.mrb[31].mxu0  ;;  %2837 = vmatpush3.bf16.msra.mxu1 %v3719_v3  ;;  %v954_v8 = vmax.f32 %v918_v0, 0.0  ;;  %v3351_v3 = vld [vmem:[%s4308_s6 + $0x48] sm:$0xff]  }
 0x143   : > { %v913_v7 = vadd.f32 %v3695_v25, %v912_v6  ;;  %2838 = vmatprep.subr.bf16.mxu1 %v969_v61  ;;  %v952_v52 = vmax.f32 %v910_v4, 0.0  ;;  %v3506_v25 = vmov 0.0   ;;  %v3367_v61 = vld [vmem:[%s4308_s6 + $0xc0] sm:$0xff]   ;;  %v3369_v0 = vld [vmem:[%s4308_s6 + $0xc8] sm:$0xff]   ;;  %v3371_v6 = vld [vmem:[%s4308_s6 + $0xd0] sm:$0xff]  }
 0x144   : > { %v955_v9 = vmax.f32 %v921_v53, 0.0  ;;  %3047 = vmatprep.subr.bf16.mxu0 %v3506_v25  ;;  %3063 = vmatprep.mubr.msk.bf16.mxu0 %vm3507_vm0, %v3506_v25  ;;  %v3366_v53 = vld [vmem:[%s4308_s6 + $0x80] sm:$0xff]  }
 0x145   : > { %v953_v10 = vmax.f32 %v913_v7, 0.0 }
 0x146   : > { %v971_v11 = vpack.c.bf16 %v955_v9, %v954_v8  ;;  %2839 = vmatpush3.bf16.msra.mxu1 %v3717_v2  ;;  %v3350_v2 = vld [vmem:[%s4308_s6 + $0x40] sm:$0xff]   ;;  %v3368_v9 = vld [vmem:[%s4308_s6 + $0x88] sm:$0xff]  }
 0x147   : > { %v970_v12 = vpack.c.bf16 %v953_v10, %v952_v52  ;;  %3048 = vmatpush3.bf16.msra.mxu0 %v3350_v2  ;;  %v3373_v52 = vld [vmem:[%s4308_s6 + $0xd8] sm:$0xff]  }
 0x148   : > { %3049 = vmatprep.subr.bf16.mxu0 %v3506_v25 }
 0x149   : > { %2840 = vmatprep.subr.bf16.mxu1 %v970_v12  ;;  %v3370_v12 = vld [vmem:[%s4308_s6 + $0x90] sm:$0xff]  }
 0x14a   : > { %2841 = vmatpush3.bf16.msra.mxu1 %v3727_v17  ;;  %v3360_v17 = vld [vmem:[%s4308_s6 + $0x68] sm:$0xff]  }
 0x14b   : > { %2842 = vmatprep.subr.bf16.mxu1 %v971_v11  ;;  %3050 = vmatpush3.bf16.msra.mxu0 %v3351_v3 }
 0x14c   : > { %3051 = vmatprep.subr.bf16.mxu0 %v3506_v25 }
 0x14e   : > { %2843 = vmatpush3.bf16.msra.mxu1 %v3725_v16  ;;  %v3357_v16 = vld [vmem:[%s4308_s6 + $0x60] sm:$0xff]  }
 0x14f   : > { %3009 = vmatprep.subr.bf16.mxu1 %v3506_v25  ;;  %3052 = vmatpush3.bf16.msra.mxu0 %v3352_v14 }
 0x150   : > { %3053 = vmatprep.subr.bf16.mxu0 %v3506_v25 }
 0x151   : > { %1015 = vmatmul.mubr.bf16.vlgmr.msra.gmra.mrb[0].mxu1 %v3338_v13  ;;  %v3375_v13 = vld [vmem:[%s4308_s6 + $0xe0] sm:$0xff]  }
 0x152   : > { %3011 = vmatprep.mubr.msk.bf16.mxu1 %vm3507_vm0, %v3506_v25 }
 0x153   : > { %3054 = vmatpush3.bf16.msra.mxu0 %v3354_v15  ;;  %v3372_v15 = vld [vmem:[%s4308_s6 + $0x98] sm:$0xff]  }
 0x154   : > { %3055 = vmatprep.subr.bf16.mxu0 %v3506_v25 }
 0x157   : > { %3056 = vmatpush3.bf16.msra.mxu0 %v3357_v16  ;;  %v3377_v16 = vld [vmem:[%s4308_s6 + $0xe8] sm:$0xff]  }
 0x158   : > { %3057 = vmatprep.subr.bf16.mxu0 %v3506_v25 }
 0x15b   : > { %3058 = vmatpush3.bf16.msra.mxu0 %v3360_v17 }
 0x15c   : > { %3059 = vmatprep.subr.bf16.mxu0 %v3506_v25 }
 0x15f   : > { %3060 = vmatpush3.bf16.msra.mxu0 %v3363_v57 }
 0x160   : > { %3061 = vmatprep.subr.bf16.mxu0 %v3506_v25 }
 0x163   : > { %3062 = vmatpush3.bf16.msra.mxu0 %v3365_v58 }
 0x164   : > { %3087 = vmatprep.subr.bf16.mxu0 %v3506_v25 }
 0x224   : > { %v2844_v22 = vpop.f32.mrb[0].mxu1 }
 0x225   : > { %v2845_v26 = vpop.f32.mrb[1].mxu1 }
 0x226   : > { %v2846_v27 = vadd.f32 %v2845_v26, %v2844_v22  ;;  %v2847_v28 = vpop.f32.mrb[2].mxu1  ;;  %v3381_v26 = vld [vmem:[%s4308_s6 + $0xf8] sm:$0xff]  }
 0x227   : > { %v2848_v29 = vpop.f32.mrb[3].mxu1 }
 0x228   : > { %v1027_v30 = vmul.f32 %v2846_v27, %v1026_v23  ;;  %v2849_v32 = vadd.f32 %v2848_v29, %v2847_v28  ;;  %v3378_v29 = vld [vmem:[%s4308_s6 + $0xb0] sm:$0xff]  }
 0x22a   : > { %v1028_v33 = vmul.f32 %v2849_v32, %v1026_v23  ;;  %v1033_v34 = vadd.f32 %v1032_v31, %v1027_v30  ;;  %v3383_v30 = vld [vmem:[%s4308_s6 + $0x140] sm:$0xff]  }
 0x22c   : > { %v1034_v35 = vadd.f32 %v1032_v31, %v1028_v33 }
 0x22e   : > { %v1035_v36 = vpack.c.bf16 %v1034_v35, %v1033_v34  ;;  %v3380_v34 = vld [vmem:[%s4308_s6 + $0xb8] sm:$0xff]   ;;  %v3385_v35 = vld [vmem:[%s4308_s6 + $0x148] sm:$0xff]  }
 0x230   : > { %3010 = vmatpush3.bf16.msra.mxu1 %v1035_v36 }
 0x231   : > { %3067 = vmatprep.subr.bf16.mxu1 %v3506_v25 }
 0x233   : > { %3012 = vmatmul.mubr.msk.bf16.vlgmr.msra.gmra.mrb[4].mxu1 %vm1081_vm1, %v3341_v37 }
 0x234   : > { %3015 = vmatprep.mubr.msk.bf16.mxu1 %vm3507_vm0, %v3506_v25  ;;  %3068 = vmatpush3.bf16.msra.mxu1 %v3353_v39  ;;  %v3382_v39 = vld [vmem:[%s4308_s6 + $0x100] sm:$0xff]  }
 0x235   : > { %3069 = vmatprep.subr.bf16.mxu1 %v3506_v25 }
 0x238   : > { %3070 = vmatpush3.bf16.msra.mxu1 %v3355_v41  ;;  %v3387_v41 = vld [vmem:[%s4308_s6 + $0x150] sm:$0xff]  }
 0x239   : > { %3071 = vmatprep.subr.bf16.mxu1 %v3506_v25 }
 0x23b   : > { %3016 = vmatmul.mubr.msk.bf16.gmra.mrb[8].mxu1 %vm1081_vm1, %v3342_v42 }
 0x23c   : > { %3019 = vmatprep.mubr.msk.bf16.mxu1 %vm3507_vm0, %v3506_v25  ;;  %3072 = vmatpush3.bf16.msra.mxu1 %v3356_v43 }
 0x23d   : > { %3073 = vmatprep.subr.bf16.mxu1 %v3506_v25 }
 0x240   : > { %3074 = vmatpush3.bf16.msra.mxu1 %v3358_v44 }
 0x241   : > { %3075 = vmatprep.subr.bf16.mxu1 %v3506_v25 }
 0x243   : > { %3020 = vmatmul.mubr.msk.bf16.gmra.mrb[12].mxu1 %vm1081_vm1, %v3343_v45  ;;  %v3384_v45 = vld [vmem:[%s4308_s6 + $0x108] sm:$0xff]  }
 0x244   : > { %3023 = vmatprep.mubr.msk.bf16.mxu1 %vm3507_vm0, %v3506_v25  ;;  %3076 = vmatpush3.bf16.msra.mxu1 %v3359_v46  ;;  %v3389_v46 = vld [vmem:[%s4308_s6 + $0x158] sm:$0xff]  }
 0x245   : > { %3077 = vmatprep.subr.bf16.mxu1 %v3506_v25 }
 0x248   : > { %3078 = vmatpush3.bf16.msra.mxu1 %v3361_v47 }
 0x249   : > { %3079 = vmatprep.subr.bf16.mxu1 %v3506_v25 }
 0x24b   : > { %3024 = vmatmul.mubr.msk.bf16.gmra.mrb[16].mxu1 %vm1081_vm1, %v3344_v48 }
 0x24c   : > { %3027 = vmatprep.mubr.msk.bf16.mxu1 %vm3507_vm0, %v3506_v25  ;;  %3080 = vmatpush3.bf16.msra.mxu1 %v3362_v49  ;;  %v3386_v49 = vld [vmem:[%s4308_s6 + $0x110] sm:$0xff]  }
 0x24d   : > { %3081 = vmatprep.subr.bf16.mxu1 %v3506_v25 }
 0x250   : > { %3082 = vmatpush3.bf16.msra.mxu1 %v3364_v56  ;;  %v3393_v56 = vld [vmem:[%s4308_s6 + $0x168] sm:$0xff]  }
 0x251   : > { %3107 = vmatprep.subr.bf16.mxu1 %v3506_v25 }
 0x253   : > { %3028 = vmatmul.mubr.msk.bf16.gmra.mrb[20].mxu1 %vm1081_vm1, %v3345_v50  ;;  %v3391_v50 = vld [vmem:[%s4308_s6 + $0x160] sm:$0xff]  }
 0x254   : > { %3031 = vmatprep.mubr.msk.bf16.mxu1 %vm3507_vm0, %v3506_v25 }
 0x25b   : > { %3032 = vmatmul.mubr.msk.bf16.gmra.mrb[24].mxu1 %vm1081_vm1, %v3346_v51 }
 0x25c   : > { %3035 = vmatprep.mubr.msk.bf16.mxu1 %vm3507_vm0, %v3506_v25 }
 0x263   : > { %3036 = vmatmul.mubr.msk.bf16.gmra.mrb[28].mxu1 %vm1081_vm1, %v3347_v54 }
 0x264   : > { %3039 = vmatprep.mubr.msk.bf16.mxu1 %vm3507_vm0, %v3506_v25 }
 0x26b   : > { %3040 = vmatmul.mubr.msk.bf16.gmra.mrb[32].mxu1 %vm1081_vm1, %v3348_v55 }
 0x26c   : > { %3043 = vmatprep.mubr.msk.bf16.mxu1 %vm3507_vm0, %v3506_v25 }
 0x273   : > { %3044 = vmatmul.mubr.msk.bf16.gmra.mrb[36].mxu1 %vm1081_vm1, %v3349_v40  ;;  %v3388_v40 = vld [vmem:[%s4308_s6 + $0x118] sm:$0xff]  }
 0x274   : > { %3083 = vmatprep.mubr.msk.bf16.mxu1 %vm3507_vm0, %v3506_v25 }
 0x306   : > { %v1143_v59 = vpop.f32.mrb[4].mxu1 }
 0x307   : > { %v3013_v38 = vpop.f32.mrb[5].mxu1 }
 0x308   : > { %v1146_v60 = vpop.f32.mrb[6].mxu1  ;;  %v3395_v38 = vld [vmem:[%s4308_s6 + $0x170] sm:$0xff]  }
 0x309   : > { %v1214_v62 = vpack.c.bf16 %v1146_v60, %v1143_v59  ;;  %v3014_v63 = vpop.f32.mrb[7].mxu1  ;;  %v3390_v59 = vld [vmem:[%s4308_s6 + $0x120] sm:$0xff]  }
 0x30a   : > { %v3392_v63 = vld [vmem:[%s4308_s6 + $0x128] sm:$0xff]  }
 0x30b   : > { %3084 = vmatmul.mubr.bf16.vlgmr.msra.gmra.mrb[40].mxu1 %v1214_v62 }
 0x30c   : > { %3108 = vmatpush3.bf16.msra.mxu1 %v3367_v61  ;;  %3123 = vmatprep.mubr.msk.bf16.mxu1 %vm3507_vm0, %v3506_v25 }
 0x30d   : > { %3109 = vmatprep.subr.bf16.mxu1 %v3506_v25 }
 0x30e   : > { %v1151_v1 = vpop.f32.mrb[8].mxu1 }
 0x30f   : > { %v3017_v4 = vpop.f32.mrb[9].mxu1 }
 0x310   : > { %v1154_v5 = vpop.f32.mrb[10].mxu1  ;;  %3110 = vmatpush3.bf16.msra.mxu1 %v3369_v0  ;;  %v3397_v0 = vld [vmem:[%s4308_s6 + $0x178] sm:$0xff]  }
 0x311   : > { %v1215_v7 = vpack.c.bf16 %v1154_v5, %v1151_v1  ;;  %v3018_v8 = vpop.f32.mrb[11].mxu1  ;;  %3111 = vmatprep.subr.bf16.mxu1 %v3506_v25  ;;  %v3394_v5 = vld [vmem:[%s4308_s6 + $0x130] sm:$0xff]  }
 0x313   : > { %3064 = vmatmul.mubr.bf16.vlgmr.msra.gmra.mrb[32].mxu0 %v1215_v7 }
 0x314   : > { %3088 = vmatpush3.bf16.msra.mxu0 %v3366_v53  ;;  %3112 = vmatpush3.bf16.msra.mxu1 %v3371_v6  ;;  %v3399_v53 = vld [vmem:[%s4308_s6 + $0x1c0] sm:$0xff]  }
 0x315   : > { %3089 = vmatprep.subr.bf16.mxu0 %v3506_v25  ;;  %3113 = vmatprep.subr.bf16.mxu1 %v3506_v25 }
 0x316   : > { %v3908_v10 = vpop.f32.mrb[12].mxu1  ;;  %3103 = vmatprep.mubr.msk.bf16.mxu0 %vm3507_vm0, %v3506_v25 }
 0x317   : > { %v3021_v11 = vpop.f32.mrb[13].mxu1 }
 0x318   : > { %3090 = vmatpush3.bf16.msra.mxu0 %v3368_v9  ;;  %3114 = vmatpush3.bf16.msra.mxu1 %v3373_v52  ;;  %v1162_v2 = vpop.f32.mrb[14].mxu1  ;;  %v3396_v9 = vld [vmem:[%s4308_s6 + $0x138] sm:$0xff]   ;;  %v3401_v52 = vld [vmem:[%s4308_s6 + $0x1c8] sm:$0xff]   ;;  %v3403_v11 = vld [vmem:[%s4308_s6 + $0x1d0] sm:$0xff]  }
 0x319   : > { %3091 = vmatprep.subr.bf16.mxu0 %v3506_v25  ;;  %3115 = vmatprep.subr.bf16.mxu1 %v3506_v25  ;;  %v1216_v3 = vpack.c.bf16 %v1162_v2, %v3908_v10  ;;  %v3022_v14 = vpop.f32.mrb[15].mxu1  ;;  %v3398_v10 = vld [vmem:[%s4308_s6 + $0x180] sm:$0xff]   ;;  %v3402_v2 = vld [vmem:[%s4308_s6 + $0x190] sm:$0xff]  }
 0x31a   : > { %v3404_v14 = vld [vmem:[%s4308_s6 + $0x198] sm:$0xff]  }
 0x31c   : > { %3092 = vmatpush3.bf16.msra.mxu0 %v3370_v12  ;;  %3116 = vmatpush3.bf16.msra.mxu1 %v3375_v13  ;;  %v3400_v12 = vld [vmem:[%s4308_s6 + $0x188] sm:$0xff]   ;;  %v3405_v13 = vld [vmem:[%s4308_s6 + $0x1d8] sm:$0xff]  }
 0x31d   : > { %3093 = vmatprep.subr.bf16.mxu0 %v3506_v25  ;;  %3117 = vmatprep.subr.bf16.mxu1 %v3506_v25 }
 0x31e   : > { %v1167_v17 = vpop.f32.mrb[16].mxu1 }
 0x31f   : > { %v3025_v18 = vpop.f32.mrb[17].mxu1 }
 0x320   : > { %3094 = vmatpush3.bf16.msra.mxu0 %v3372_v15  ;;  %3118 = vmatpush3.bf16.msra.mxu1 %v3377_v16  ;;  %v1170_v21 = vpop.f32.mrb[18].mxu1  ;;  %v3409_v15 = vld [vmem:[%s4308_s6 + $0x1e8] sm:$0xff]   ;;  %v3406_v16 = vld [vmem:[%s4308_s6 + $0x1a0] sm:$0xff]  }
 0x321   : > { %3095 = vmatprep.subr.bf16.mxu0 %v3506_v25  ;;  %3119 = vmatprep.subr.bf16.mxu1 %v3506_v25  ;;  %v1217_v22 = vpack.c.bf16 %v1170_v21, %v1167_v17  ;;  %v3026_v23 = vpop.f32.mrb[19].mxu1  ;;  %v3411_v17 = vld [vmem:[%s4308_s6 + $0x1f0] sm:$0xff]   ;;  %v3408_v18 = vld [vmem:[%s4308_s6 + $0x1a8] sm:$0xff]   ;;  %v3412_v21 = vld [vmem:[%s4308_s6 + $0x1b8] sm:$0xff]  }
 0x322   : > { %v3415_v23 = vld [vmem:[%s4308_s6 + $0x208] sm:$0xff]  }
 0x324   : > { %3096 = vmatpush3.bf16.msra.mxu0 %v3374_v19  ;;  %3120 = vmatpush3.bf16.msra.mxu1 %v3379_v20  ;;  %v3413_v19 = vld [vmem:[%s4308_s6 + $0x1f8] sm:$0xff]   ;;  %v3410_v20 = vld [vmem:[%s4308_s6 + $0x1b0] sm:$0xff]  }
 0x325   : > { %3097 = vmatprep.subr.bf16.mxu0 %v3506_v25  ;;  %3121 = vmatprep.subr.bf16.mxu1 %v3506_v25 }
 0x326   : > { %v3945_v27 = vpop.f32.mrb[20].mxu1 }
 0x327   : > { %v3029_v28 = vpop.f32.mrb[21].mxu1 }
 0x328   : > { %3098 = vmatpush3.bf16.msra.mxu0 %v3376_v24  ;;  %3122 = vmatpush3.bf16.msra.mxu1 %v3381_v26  ;;  %v3953_v31 = vpop.f32.mrb[22].mxu1  ;;  %v3416_v24 = vld [vmem:[%s4308_s6 + $0x210] sm:$0xff]   ;;  %v3417_v26 = vld [vmem:[%s4308_s6 + $0x218] sm:$0xff]   ;;  %v3419_v28 = vld [vmem:[%s4308_s6 + $0x228] sm:$0xff]  }
 0x329   : > { %3099 = vmatprep.subr.bf16.mxu0 %v3506_v25  ;;  %3147 = vmatprep.subr.bf16.mxu1 %v3506_v25  ;;  %v1218_v32 = vpack.c.bf16 %v3953_v31, %v3945_v27  ;;  %v3030_v33 = vpop.f32.mrb[23].mxu1  ;;  %v3418_v27 = vld [vmem:[%s4308_s6 + $0x220] sm:$0xff]  }
 0x32b   : > { %3124 = vmatmul.mubr.bf16.vlgmr.msra.gmra.mrb[44].mxu1 %v1217_v22  ;;  %v3414_v22 = vld [vmem:[%s4308_s6 + $0x200] sm:$0xff]  }
 0x32c   : > { %3100 = vmatpush3.bf16.msra.mxu0 %v3378_v29  ;;  %3148 = vmatpush3.bf16.msra.mxu1 %v3383_v30  ;;  %v3420_v29 = vld [vmem:[%s4308_s6 + $0x230] sm:$0xff]   ;;  %v3421_v30 = vld [vmem:[%s4308_s6 + $0x238] sm:$0xff]  }
 0x32d   : > { %3101 = vmatprep.subr.bf16.mxu0 %v3506_v25  ;;  %3149 = vmatprep.subr.bf16.mxu1 %v3506_v25 }
 0x32e   : > { %v3967_v36 = vpop.f32.mrb[24].mxu1  ;;  %3163 = vmatprep.mubr.msk.bf16.mxu1 %vm3507_vm0, %v3506_v25 }
 0x32f   : > { %v3033_v37 = vpop.f32.mrb[25].mxu1 }
 0x330   : > { %3102 = vmatpush3.bf16.msra.mxu0 %v3380_v34  ;;  %3150 = vmatpush3.bf16.msra.mxu1 %v3385_v35  ;;  %v1186_v42 = vpop.f32.mrb[26].mxu1 }
 0x331   : > { %3127 = vmatprep.subr.bf16.mxu0 %v3506_v25  ;;  %3151 = vmatprep.subr.bf16.mxu1 %v3506_v25  ;;  %v1219_v43 = vpack.c.bf16 %v1186_v42, %v3967_v36  ;;  %v3034_v44 = vpop.f32.mrb[27].mxu1 }
 0x333   : > { %3104 = vmatmul.mubr.bf16.vlgmr.msra.gmra.mrb[36].mxu0 %v1216_v3  ;;  %v3407_v3 = vld [vmem:[%s4308_s6 + $0x1e0] sm:$0xff]  }
 0x334   : > { %3128 = vmatpush3.bf16.msra.mxu0 %v3382_v39  ;;  %3152 = vmatpush3.bf16.msra.mxu1 %v3387_v41 }
 0x335   : > { %3129 = vmatprep.subr.bf16.mxu0 %v3506_v25  ;;  %3153 = vmatprep.subr.bf16.mxu1 %v3506_v25 }
 0x336   : > { %3143 = vmatprep.mubr.msk.bf16.mxu0 %vm3507_vm0, %v3506_v25  ;;  %v3990_v47 = vpop.f32.mrb[28].mxu1 }
 0x337   : > { %v3037_v48 = vpop.f32.mrb[29].mxu1 }
 0x338   : > { %3130 = vmatpush3.bf16.msra.mxu0 %v3384_v45  ;;  %3154 = vmatpush3.bf16.msra.mxu1 %v3389_v46  ;;  %v3998_v51 = vpop.f32.mrb[30].mxu1 }
 0x339   : > { %3131 = vmatprep.subr.bf16.mxu0 %v3506_v25  ;;  %3155 = vmatprep.subr.bf16.mxu1 %v3506_v25  ;;  %v1220_v54 = vpack.c.bf16 %v3998_v51, %v3990_v47  ;;  %v3038_v55 = vpop.f32.mrb[31].mxu1 }
 0x33c   : > { %3132 = vmatpush3.bf16.msra.mxu0 %v3386_v49  ;;  %3156 = vmatpush3.bf16.msra.mxu1 %v3391_v50 }
 0x33d   : > { %3133 = vmatprep.subr.bf16.mxu0 %v3506_v25  ;;  %3157 = vmatprep.subr.bf16.mxu1 %v3506_v25 }
 0x33e   : > { %v4012_v57 = vpop.f32.mrb[32].mxu1 }
 0x33f   : > { %v3041_v58 = vpop.f32.mrb[33].mxu1 }
 0x340   : > { %3134 = vmatpush3.bf16.msra.mxu0 %v3388_v40  ;;  %3158 = vmatpush3.bf16.msra.mxu1 %v3393_v56  ;;  %v4020_v60 = vpop.f32.mrb[34].mxu1 }
 0x341   : > { %3135 = vmatprep.subr.bf16.mxu0 %v3506_v25  ;;  %3159 = vmatprep.subr.bf16.mxu1 %v3506_v25  ;;  %v1221_v61 = vpack.c.bf16 %v4020_v60, %v4012_v57  ;;  %v3042_v62 = vpop.f32.mrb[35].mxu1 }
 0x344   : > { %3136 = vmatpush3.bf16.msra.mxu0 %v3390_v59  ;;  %3160 = vmatpush3.bf16.msra.mxu1 %v3395_v38 }
 0x345   : > { %3137 = vmatprep.subr.bf16.mxu0 %v3506_v25  ;;  %3161 = vmatprep.subr.bf16.mxu1 %v3506_v25 }
 0x346   : > { %v4034_v1 = vpop.f32.mrb[36].mxu1 }
 0x347   : > { %v3045_v4 = vpop.f32.mrb[37].mxu1 }
 0x348   : > { %3138 = vmatpush3.bf16.msra.mxu0 %v3392_v63  ;;  %3162 = vmatpush3.bf16.msra.mxu1 %v3397_v0  ;;  %v4042_v6 = vpop.f32.mrb[38].mxu1 }
 0x349   : > { %3139 = vmatprep.subr.bf16.mxu0 %v3506_v25  ;;  %3187 = vmatprep.subr.bf16.mxu1 %v3506_v25  ;;  %v1222_v7 = vpack.c.bf16 %v4042_v6, %v4034_v1  ;;  %v3046_v8 = vpop.f32.mrb[39].mxu1 }
 0x34b   : > { %3164 = vmatmul.mubr.bf16.vlgmr.msra.gmra.mrb[48].mxu1 %v1219_v43 }
 0x34c   : > { %3140 = vmatpush3.bf16.msra.mxu0 %v3394_v5  ;;  %3188 = vmatpush3.bf16.msra.mxu1 %v3399_v53 }
 0x34d   : > { %3141 = vmatprep.subr.bf16.mxu0 %v3506_v25  ;;  %3189 = vmatprep.subr.bf16.mxu1 %v3506_v25 }
 0x34e   : > { %3203 = vmatprep.mubr.msk.bf16.mxu1 %vm3507_vm0, %v3506_v25 }
 0x350   : > { %3142 = vmatpush3.bf16.msra.mxu0 %v3396_v9  ;;  %3190 = vmatpush3.bf16.msra.mxu1 %v3401_v52 }
 0x351   : > { %3167 = vmatprep.subr.bf16.mxu0 %v3506_v25  ;;  %3191 = vmatprep.subr.bf16.mxu1 %v3506_v25 }
 0x353   : > { %3144 = vmatmul.mubr.bf16.vlgmr.msra.gmra.mrb[40].mxu0 %v1218_v32 }
 0x354   : > { %3168 = vmatpush3.bf16.msra.mxu0 %v3398_v10  ;;  %3192 = vmatpush3.bf16.msra.mxu1 %v3403_v11 }
 0x355   : > { %3169 = vmatprep.subr.bf16.mxu0 %v3506_v25  ;;  %3193 = vmatprep.subr.bf16.mxu1 %v3506_v25 }
 0x356   : > { %3183 = vmatprep.mubr.msk.bf16.mxu0 %vm3507_vm0, %v3506_v25 }
 0x358   : > { %3170 = vmatpush3.bf16.msra.mxu0 %v3400_v12  ;;  %3194 = vmatpush3.bf16.msra.mxu1 %v3405_v13 }
 0x359   : > { %3171 = vmatprep.subr.bf16.mxu0 %v3506_v25  ;;  %3195 = vmatprep.subr.bf16.mxu1 %v3506_v25 }
 0x35c   : > { %3172 = vmatpush3.bf16.msra.mxu0 %v3402_v2  ;;  %3196 = vmatpush3.bf16.msra.mxu1 %v3407_v3  ;;  %v2781_v3 = vld [vmem:[%s4309_s7] ss:$0 sm:$0xff] }
 0x35d   : > { %3173 = vmatprep.subr.bf16.mxu0 %v3506_v25  ;;  %3197 = vmatprep.subr.bf16.mxu1 %v3506_v25 }
 0x360   : > { %3174 = vmatpush3.bf16.msra.mxu0 %v3404_v14  ;;  %3198 = vmatpush3.bf16.msra.mxu1 %v3409_v15 }
 0x361   : > { %3175 = vmatprep.subr.bf16.mxu0 %v3506_v25  ;;  %3199 = vmatprep.subr.bf16.mxu1 %v3506_v25 }
 0x364   : > { %3176 = vmatpush3.bf16.msra.mxu0 %v3406_v16  ;;  %3200 = vmatpush3.bf16.msra.mxu1 %v3411_v17 }
 0x365   : > { %3177 = vmatprep.subr.bf16.mxu0 %v3506_v25  ;;  %3201 = vmatprep.subr.bf16.mxu1 %v3506_v25 }
 0x368   : > { %3178 = vmatpush3.bf16.msra.mxu0 %v3408_v18  ;;  %3202 = vmatpush3.bf16.msra.mxu1 %v3413_v19 }
 0x369   : > { %3179 = vmatprep.subr.bf16.mxu0 %v3506_v25  ;;  %3227 = vmatprep.subr.bf16.mxu1 %v3506_v25 }
 0x36b   : > { %3204 = vmatmul.mubr.bf16.vlgmr.msra.gmra.mrb[52].mxu1 %v1221_v61 }
 0x36c   : > { %3180 = vmatpush3.bf16.msra.mxu0 %v3410_v20  ;;  %3229 = vmatprep.mubr.msk.bf16.mxu1 %vm3507_vm0, %v3506_v25 }
 0x36d   : > { %3181 = vmatprep.subr.bf16.mxu0 %v3506_v25 }
 0x370   : > { %3182 = vmatpush3.bf16.msra.mxu0 %v3412_v21 }
 0x371   : > { %3207 = vmatprep.subr.bf16.mxu0 %v3506_v25 }
 0x373   : > { %3184 = vmatmul.mubr.bf16.vlgmr.msra.gmra.mrb[44].mxu0 %v1220_v54 }
 0x374   : > { %3208 = vmatpush3.bf16.msra.mxu0 %v3414_v22  ;;  %3223 = vmatprep.mubr.msk.bf16.mxu0 %vm3507_vm0, %v3506_v25 }
 0x375   : > { %3209 = vmatprep.subr.bf16.mxu0 %v3506_v25 }
 0x378   : > { %3210 = vmatpush3.bf16.msra.mxu0 %v3415_v23 }
 0x379   : > { %3211 = vmatprep.subr.bf16.mxu0 %v3506_v25 }
 0x37c   : > { %3212 = vmatpush3.bf16.msra.mxu0 %v3416_v24 }
 0x37d   : > { %3213 = vmatprep.subr.bf16.mxu0 %v3506_v25 }
 0x380   : > { %3214 = vmatpush3.bf16.msra.mxu0 %v3417_v26  ;;  %v529_v26 = vld [vmem:[%s4310_s8] sm:$0x1] }
 0x381   : > { %3215 = vmatprep.subr.bf16.mxu0 %v3506_v25 }
 0x384   : > { %3216 = vmatpush3.bf16.msra.mxu0 %v3418_v27  ;;  %v3422_v27 = vld [vmem:[%s4312_s10] sm:$0xff]  }
 0x385   : > { %3217 = vmatprep.subr.bf16.mxu0 %v3506_v25 }
 0x388   : > { %3218 = vmatpush3.bf16.msra.mxu0 %v3419_v28  ;;  %v3423_v28 = vld [vmem:[%s4312_s10 + $0x8] sm:$0xff]  }
 0x389   : > { %3219 = vmatprep.subr.bf16.mxu0 %v3506_v25 }
 0x38c   : > { %3220 = vmatpush3.bf16.msra.mxu0 %v3420_v29  ;;  %v3424_v29 = vld [vmem:[%s4312_s10 + $0x10] sm:$0xff]  }
 0x38d   : > { %3221 = vmatprep.subr.bf16.mxu0 %v3506_v25 }
 0x390   : > { %3222 = vmatpush3.bf16.msra.mxu0 %v3421_v30  ;;  %v3425_v30 = vld [vmem:[%s4312_s10 + $0x18] sm:$0xff]  }
 0x391   : > { %3253 = vmatprep.subr.bf16.mxu0 %v3506_v25 }
 0x393   : > { %3224 = vmatmul.mubr.bf16.vlgmr.msra.gmra.mrb[48].mxu0 %v1222_v7 }
 0x394   : > { %3269 = vmatprep.mubr.msk.bf16.mxu0 %vm3507_vm0, %v3506_v25 }
 0x3de   : > { %v1427_v31 = vpop.f32.mrb[40].mxu1 }
 0x3df   : > { %v3085_v32 = vpop.f32.mrb[41].mxu1 }
 0x3e0   : > { %v1430_v33 = vpop.f32.mrb[42].mxu1  ;;  %v3427_v32 = vld [vmem:[%s4312_s10 + $0x28] sm:$0xff]  }
 0x3e1   : > { %v3086_v34 = vpop.f32.mrb[43].mxu1 }
 0x3e2   : > { %v3429_v34 = vld [vmem:[%s4312_s10 + $0x38] sm:$0xff]  }
 0x3e6   : > { %v1338_v35 = vpop.f32.mrb[32].mxu0 }
 0x3e7   : > { %v1428_v36 = vadd.f32 %v1427_v31, %v1338_v35  ;;  %v3065_v37 = vpop.f32.mrb[33].mxu0  ;;  %v3426_v31 = vld [vmem:[%s4312_s10 + $0x20] sm:$0xff]  }
 0x3e8   : > { %v1341_v39 = vpop.f32.mrb[34].mxu0  ;;  %v524_v35 = vld [vmem:[%s4311_s9] sm:$0x3] }
 0x3e9   : > { %v1431_v41 = vadd.f32 %v1430_v33, %v1341_v39  ;;  %v3066_v42 = vpop.f32.mrb[35].mxu0  ;;  %v3428_v33 = vld [vmem:[%s4312_s10 + $0x30] sm:$0xff]  }
 0x3fe   : > { %v1641_v43 = vpop.f32.mrb[44].mxu1 }
 0x3ff   : > { %v3125_v44 = vpop.f32.mrb[45].mxu1 }
 0x400   : > { %v1644_v45 = vpop.f32.mrb[46].mxu1 }
 0x401   : > { %v3126_v46 = vpop.f32.mrb[47].mxu1 }
 0x402   : > { %v3430_v46 = vld [vmem:[%s4316_s14] sm:$0xff]  }
 0x403   : > { %3254 = vmatpush3.bf16.msra.mxu0 %v3430_v46 }
 0x404   : > { %3255 = vmatprep.subr.bf16.mxu0 %v3506_v25 }
 0x406   : > { %v1533_v47 = vpop.f32.mrb[36].mxu0 }
 0x407   : > { %v1540_v48 = vadd.f32 %v1533_v47, %v1428_v36  ;;  %v3105_v49 = vpop.f32.mrb[37].mxu0  ;;  %v2246_v36 = vrot.slane %v524_v35, 1  ;;  %v3431_v47 = vld [vmem:[%s4316_s14 + $0x8] sm:$0xff]  }
 0x408   : > { %v1536_v50 = vpop.f32.mrb[38].mxu0  ;;  %3256 = vmatpush3.bf16.msra.mxu0 %v3431_v47  ;;  %v3433_v49 = vld [vmem:[%s4316_s14 + $0x18] sm:$0xff]  }
 0x409   : > { %v1541_v51 = vadd.f32 %v1536_v50, %v1431_v41  ;;  %v1648_v54 = vadd.f32 %v1641_v43, %v1540_v48  ;;  %v3106_v55 = vpop.f32.mrb[39].mxu0  ;;  %3257 = vmatprep.subr.bf16.mxu0 %v3506_v25  ;;  %v3432_v48 = vld [vmem:[%s4316_s14 + $0x10] sm:$0xff]   ;;  %v3434_v50 = vld [vmem:[%s4316_s14 + $0x20] sm:$0xff]  }
 0x40a   : > { %v3437_v55 = vld [vmem:[%s4316_s14 + $0x38] sm:$0xff]  }
 0x40b   : > { %v1649_v40 = vadd.f32 %v1644_v45, %v1541_v51  ;;  %v3435_v51 = vld [vmem:[%s4316_s14 + $0x28] sm:$0xff]  }
 0x40c   : > { %3258 = vmatpush3.bf16.msra.mxu0 %v3432_v48 }
 0x40d   : > { %3259 = vmatprep.subr.bf16.mxu0 %v3506_v25 }
 0x410   : > { %3260 = vmatpush3.bf16.msra.mxu0 %v3433_v49 }
 0x411   : > { %3261 = vmatprep.subr.bf16.mxu0 %v3506_v25 }
 0x414   : > { %3262 = vmatpush3.bf16.msra.mxu0 %v3434_v50 }
 0x415   : > { %3263 = vmatprep.subr.bf16.mxu0 %v3506_v25 }
 0x418   : > { %3264 = vmatpush3.bf16.msra.mxu0 %v3435_v51 }
 0x419   : > { %3265 = vmatprep.subr.bf16.mxu0 %v3506_v25 }
 0x41e   : > { %v1857_v56 = vpop.f32.mrb[48].mxu1 }
 0x41f   : > { %v3165_v57 = vpop.f32.mrb[49].mxu1 }
 0x420   : > { %v1860_v58 = vpop.f32.mrb[50].mxu1 }
 0x421   : > { %v3166_v59 = vpop.f32.mrb[51].mxu1 }
 0x426   : > { %v1749_v38 = vpop.f32.mrb[40].mxu0 }
 0x427   : > { %v1756_v60 = vadd.f32 %v1749_v38, %v1648_v54  ;;  %v3145_v61 = vpop.f32.mrb[41].mxu0  ;;  %v3436_v54 = vld [vmem:[%s4316_s14 + $0x30] sm:$0xff]  }
 0x428   : > { %v1752_v62 = vpop.f32.mrb[42].mxu0  ;;  %3266 = vmatpush3.bf16.msra.mxu0 %v3436_v54 }
 0x429   : > { %v1757_v63 = vadd.f32 %v1752_v62, %v1649_v40  ;;  %v1864_v0 = vadd.f32 %v1857_v56, %v1756_v60  ;;  %v3146_v1 = vpop.f32.mrb[43].mxu0  ;;  %3267 = vmatprep.subr.bf16.mxu0 %v3506_v25  ;;  %v522_v40 = vld [vmem:[%s4313_s11] sm:$0x1] }
 0x42a   : > { %v525_v56 = vld [vmem:[%s4314_s12] sm:$0x3] }
 0x42b   : > { %v1865_v4 = vadd.f32 %v1860_v58, %v1757_v63  ;;  %v2358_v61 = vrot.slane %v525_v56, 1 }
 0x42c   : > { %3268 = vmatpush3.bf16.msra.mxu0 %v3437_v55 }
 0x43e   : > { %v2073_v5 = vpop.f32.mrb[52].mxu1 }
 0x43f   : > { %v3205_v53 = vpop.f32.mrb[53].mxu1 }
 0x440   : > { %v2076_v6 = vpop.f32.mrb[54].mxu1 }
 0x441   : > { %v3206_v7 = vpop.f32.mrb[55].mxu1 }
 0x446   : > { %v1965_v8 = vpop.f32.mrb[44].mxu0 }
 0x447   : > { %v1972_v9 = vadd.f32 %v1965_v8, %v1864_v0  ;;  %v3185_v52 = vpop.f32.mrb[45].mxu0 }
 0x448   : > { %v1968_v10 = vpop.f32.mrb[46].mxu0  ;;  %v564_v52 = vld [vmem:[%s4317_s15] sm:$0x1] }
 0x449   : > { %v1973_v11 = vadd.f32 %v1968_v10, %v1865_v4  ;;  %v2080_v12 = vadd.f32 %v2073_v5, %v1972_v9  ;;  %v3186_v13 = vpop.f32.mrb[47].mxu0  ;;  %v526_v5 = vld [vmem:[%s4315_s13] sm:$0x3] }
 0x44a   : > { %v2369_v53 = vrot.slane %v526_v5, 1 }
 0x44b   : > { %v2081_v2 = vadd.f32 %v2076_v6, %v1973_v11 }
 0x466   : > { %v2181_v14 = vpop.f32.mrb[48].mxu0 }
 0x467   : > { %v2188_v15 = vadd.f32 %v2181_v14, %v2080_v12  ;;  %v3225_v16 = vpop.f32.mrb[49].mxu0 }
 0x468   : > { %v2184_v17 = vpop.f32.mrb[50].mxu0 }
 0x469   : > { %v2196_v18 = vadd.f32 %v2781_v3, %v2188_v15  ;;  %v2189_v19 = vadd.f32 %v2184_v17, %v2081_v2  ;;  %v3226_v20 = vpop.f32.mrb[51].mxu0 }
 0x46b   : > { %v2197_v21 = vadd.f32 %v2781_v3, %v2189_v19  ;;  %v2198_v22 = vmax.f32 %v2196_v18, 0.0 }
 0x46d   : > { %v2199_v23 = vmax.f32 %v2197_v21, 0.0 }
 0x46f   : > { %v2200_v24 = vpack.c.bf16 %v2199_v23, %v2198_v22 }
 0x471   : > { %3228 = vmatpush3.bf16.msra.mxu1 %v2200_v24 }
 0x472   : > { %3233 = vmatprep.subr.bf16.mxu1 %v3506_v25 }
 0x474   : > { %3230 = vmatmul.mubr.msk.bf16.vlgmr.msra.gmra.mrb[56].mxu1 %vm1081_vm1, %v529_v26 }
 0x475   : > { %3234 = vmatpush3.bf16.msra.mxu1 %v3422_v27  ;;  %3249 = vmatprep.mubr.msk.bf16.mxu1 %vm3507_vm0, %v3506_v25 }
 0x476   : > { %3235 = vmatprep.subr.bf16.mxu1 %v3506_v25 }
 0x479   : > { %3236 = vmatpush3.bf16.msra.mxu1 %v3423_v28 }
 0x47a   : > { %3237 = vmatprep.subr.bf16.mxu1 %v3506_v25 }
 0x47d   : > { %3238 = vmatpush3.bf16.msra.mxu1 %v3424_v29 }
 0x47e   : > { %3239 = vmatprep.subr.bf16.mxu1 %v3506_v25 }
 0x481   : > { %3240 = vmatpush3.bf16.msra.mxu1 %v3425_v30 }
 0x482   : > { %3241 = vmatprep.subr.bf16.mxu1 %v3506_v25 }
 0x485   : > { %3242 = vmatpush3.bf16.msra.mxu1 %v3426_v31 }
 0x486   : > { %3243 = vmatprep.subr.bf16.mxu1 %v3506_v25 }
 0x489   : > { %3244 = vmatpush3.bf16.msra.mxu1 %v3427_v32 }
 0x48a   : > { %3245 = vmatprep.subr.bf16.mxu1 %v3506_v25 }
 0x48d   : > { %3246 = vmatpush3.bf16.msra.mxu1 %v3428_v33 }
 0x48e   : > { %3247 = vmatprep.subr.bf16.mxu1 %v3506_v25 }
 0x491   : > { %3248 = vmatpush3.bf16.msra.mxu1 %v3429_v34 }
 0x547   : > { %v2238_v37 = vpop.f32.mrb[56].mxu1 }
 0x548   : > { %v2244_v39 = vmul.f32 %v2238_v37, %v524_v35  ;;  %v3231_v41 = vpop.f32.mrb[57].mxu1 }
 0x549   : > { %v2241_v42 = vpop.f32.mrb[58].mxu1 }
 0x54a   : > { %v2248_v43 = vadd.f32 %v2246_v36, %v2244_v39  ;;  %v3232_v44 = vpop.f32.mrb[59].mxu1 }
 0x54c   : > { %v2249_v45 = vpack.c.bf16 %v2248_v43, %v2248_v43 }
 0x54e   : > { %3250 = vmatmul.mubr.bf16.vlgmr.msra.gmra.mrb[60].mxu1 %v2249_v45 }
 0x621   : > { %v2348_v57 = vpop.f32.mrb[60].mxu1 }
 0x622   : > { %v2349_v58 = vadd.f32 %v2348_v57, %v522_v40  ;;  %v3251_v59 = vpop.f32.mrb[61].mxu1 }
 0x623   : > { %v2351_v38 = vpop.f32.mrb[62].mxu1 }
 0x624   : > { %v2354_v60 = vmax.f32 %v2349_v58, 0.0  ;;  %v3252_v62 = vpop.f32.mrb[63].mxu1 }
 0x626   : > { %v2356_v63 = vmul.f32 %v2354_v60, %v525_v56 }
 0x628   : > { %v2360_v25 = vadd.f32 %v2358_v61, %v2356_v63 }
 0x62a   : > { %v2791_v0 = vmul.f32 -1.442695, %v2360_v25 }
 0x62c   : > { %3438 = vpow2.f32 %v2791_v0 }
 0x636   : > { %v3439_v1 = vpop.eup %3438 }
 0x637   : > { %v2364_v4 = vadd.f32 1.0, %v3439_v1 }
 0x639   : > { %3440 = vrcp.f32 %v2364_v4 }
 0x643   : > { %v3441_v6 = vpop.eup %3440 }
 0x644   : > { %v2367_v7 = vmul.f32 %v3441_v6, %v526_v5 }
 0x646   : > { %v2371_v8 = vadd.f32 %v2369_v53, %v2367_v7 }
 0x648   : > { %v2372_v9 = vpack.c.bf16 %v2371_v8, %v2371_v8 }
 0x64a   : > { %3270 = vmatmul.mubr.bf16.vlgmr.msra.gmra.mrb[52].mxu0 %v2372_v9 }
 0x71d   : > { %v2455_v10 = vpop.f32.mrb[52].mxu0 }
 0x71e   : > { %v2456_v11 = vadd.f32 %v2455_v10, %v564_v52  ;;  %v3271_v12 = vpop.f32.mrb[53].mxu0 }
 0x71f   : > { %v2458_v13 = vpop.f32.mrb[54].mxu0 }
 0x720   : > { %2461 = vst [vmem:[%s513_s18] sm:$0x1] %v2456_v11  ;;  %v3272_v2 = vpop.f32.mrb[55].mxu0 }
 0x721   : > { %3455 = shalt.err (!%p3452_p3)
}
 0x722   : > { %s3456_s17 = scalar_lea.hbm %s4260_s23, 16  ;;  %s3460_s18 = scalar_lea.hbm %s4318_s16, 32 }
 0x723   : > { %p3457_p4 = scmp.ne.s32.totalorder %s4260_s23, %s3456_s17  ;;  %p3461_p9 = scmp.lt.u32.totalorder %s4260_s23, %s4318_s16 }
 0x724   : > { %p3462_p10 = scmp.lt.u32.totalorder %s3460_s18, %s3456_s17  ;;  %p3464_p12 = scmp.lt.u32.totalorder %s3456_s17, %s4260_s23 }
 0x725   : > { %p3458_p7 = pnand %p3457_p4, %p3632_p5 }
 0x726   : > { %p3463_p11 = por %p3462_p10, %p3461_p9 }
 0x727   : > { %p3459_p8 = pneg %p3458_p7 }
 0x728   : > { %p3465_p13 = por %p3464_p12, %p3463_p11 }
 0x72a   : > { %p3466_p0 = pnand %p3465_p13, %p3459_p8 }
 0x72c   : > { %3469 = shalt.err (!%p3466_p0)
}
 0x72d   : > { %3273 = dma.vmem_to_hbm [thread:$0]  (%p3632_p5), %s4262_s30, 16, %s4260_s23, %s2463_s27  }
 0x72e PF: > { %s4335_s25 = sld [smem:[#allocation7_spill]]  ;;  %s4336_s21 = sld [smem:[#allocation5_spill]] }
 0x734   : > { %p3279_p1 = scmp.ge.s32.totalorder %s4335_s25, 2  ;;  %s2487_s26 = sand.u32 1, %s4336_s21  }
 0x735   : > { %s2488_s28 = scalar_lea.sflag [#allocation3], %s2487_s26 }
 0x736   : > { %p3276_p2 = pnand %p3279_p1, %p3636_p6 }
 0x738   : > { %3487 = dma.done.wait (!%p3276_p2), %s2488_s28, 16  }
 0x739   : > { %3489 = vsyncadd (!%p3276_p2), %s2488_s28, 4294967280  ;;  %s4338_s24 = sld [smem:[#allocation8_spill]]  ;;  %s4339_s17 = sld [smem:[#allocation6_spill]] }
 0x73a   : > { %s4340_s23 = sld [smem:[#allocation9_spill]]  ;;  %s4341_s21 = smov %s3496_s22 }
 0x73f   : > { %p26_p3 = scmp.ge.s32.totalorder %s4338_s24, 4   ;;  %s4342_s22 = smov %s4339_s17 }
 0x741   :  { %28 = sbr.rel (!%p26_p3) target bundleno = 5 (0x5), region = 127 }
 0x748   :  { %2492 = vsyncpa [#allocation3], 1 }
 0x749   :  { %2494 = vsyncpa [#allocation3 + $0x1], 1 }

</bundles_post_ra>
